<compile_context>
chip_gen: v7x
topology: tpu7x:2x2x1
jax: 0.10.0
libtpu: 0.0.40
codegen_flags: <defaults>
</compile_context>

<pallas_src>
import functools
import math

import jax
import jax.numpy as jnp
from jax.experimental import pallas as pl
from jax.experimental.pallas import tpu as pltpu

# ---------------- config (small synthetic shapes) ----------------
VOCAB = 50        # input_dim
HID = 32          # hid_dim
N_LAYERS = 2      # enc_layers
N_HEADS = 4       # enc_heads
PF_DIM = 64       # enc_pf_dim
MAX_LEN = 16      # max_length
BATCH = 2
SEQ = 8
PAD_IDX = 0

# TODO(synk): dropout (enc_dropout) is a no-op here (inference / eval mode).
# TODO(synk): single fused invocation leaves the 2nd TensorCore idle on v7x;
#             at B*S=16 tokens / ~70 KB of weights the launch/DMA savings
#             dominate -- add a "parallel" batch grid axis only if B/S grow.


def _layer_norm(x, g, b, eps=1e-5):
    mu = jnp.mean(x, axis=-1, keepdims=True)
    var = jnp.mean(jnp.square(x - mu), axis=-1, keepdims=True)
    return (x - mu) * jax.lax.rsqrt(var + eps) * g + b


# ---------------- fused encoder kernel ----------------
def _fused_encoder_kernel(tok_ref, pos_ref, bias_ref,
                          wqkv_ref, bqkv_ref, wo_ref, bo_ref,
                          ln1g_ref, ln1b_ref, w1_ref, b1_ref,
                          w2_ref, b2_ref, ln2g_ref, ln2b_ref,
                          out_ref, *, n_layers, n_heads):
    T, H = tok_ref.shape
    hd = H // n_heads

    # embedding combine; the sqrt(H) token scale is folded into the table at init
    x = tok_ref[...] + pos_ref[...]                                     # (T, H)

    # additive attention bias (block-diagonal + key padding): built once in the
    # wrapper, broadcast ONCE here, reused by every statically-unrolled layer.
    bias = jnp.broadcast_to(bias_ref[...], (n_heads, T, T))             # (nh, T, T)

    for l in range(n_layers):                                           # static unroll
        # ---------- multi-head self-attention ----------
        # fused Q|K|V projection: one lane-dense (T,H)x(H,3H) MXU push
        # (the 1/sqrt(head_dim) energy scale is folded into the Q columns at init)
        qkv = jnp.dot(x, wqkv_ref[l],
                      preferred_element_type=jnp.float32) + bqkv_ref[l]      # (T, 3H)
        q = jnp.stack([qkv[:, h * hd:(h + 1) * hd]
                       for h in range(n_heads)], axis=0)                     # (nh, T, hd)
        k = jnp.stack([qkv[:, H + h * hd:H + (h + 1) * hd]
                       for h in range(n_heads)], axis=0)
        v = jnp.stack([qkv[:, 2 * H + h * hd:2 * H + (h + 1) * hd]
                       for h in range(n_heads)], axis=0)

        # attention over the flat B*S token axis (no per-batch loop / concat)
        energy = jnp.einsum('htd,hkd->htk', q, k,
                            preferred_element_type=jnp.float32) + bias       # (nh, T, T)
        p = jnp.exp(energy - jnp.max(energy, axis=-1, keepdims=True))
        attn = p * pl.reciprocal(jnp.sum(p, axis=-1, keepdims=True),
                                 approx=True)                                # softmax
        ctx = jnp.einsum('htk,hkd->htd', attn, v,
                         preferred_element_type=jnp.float32)                 # (nh, T, hd)

        # head merge folded into a single K = nh*hd output-projection matmul
        ctx_cat = jnp.concatenate([ctx[h] for h in range(n_heads)], axis=-1)  # (T, H)
        attn_out = jnp.dot(ctx_cat, wo_ref[l],
                           preferred_element_type=jnp.float32) + bo_ref[l]

        # residual + LayerNorm (dropout = identity)
        x = _layer_norm(x + attn_out, ln1g_ref[l], ln1b_ref[l])

        # ---------- position-wise feedforward ----------
        h1 = jnp.maximum(
            jnp.dot(x, w1_ref[l], preferred_element_type=jnp.float32) + b1_ref[l],
            0.0)
        ff = jnp.dot(h1, w2_ref[l], preferred_element_type=jnp.float32) + b2_ref[l]
        x = _layer_norm(x + ff, ln2g_ref[l], ln2b_ref[l])

    out_ref[...] = x


# ---------------- parameter init (deterministic) ----------------
def _linear_w(key, fan_in, fan_out):
    lim = 1.0 / math.sqrt(fan_in)
    # stored as (in, out) == PyTorch weight.T
    return jax.random.uniform(key, (fan_in, fan_out), jnp.float32, -lim, lim)


def init_params(key):
    keys = jax.random.split(key, 2 + N_LAYERS)
    hd = HID // N_HEADS
    tok_emb = jax.random.normal(keys[0], (VOCAB, HID), jnp.float32) * 0.02
    pos_emb = jax.random.normal(keys[1], (MAX_LEN, HID), jnp.float32) * 0.02

    layers = []
    for i in range(N_LAYERS):
        lk = jax.random.split(keys[2 + i], 6)
        # fold the 1/sqrt(head_dim) attention-energy scale into Wq (init-time)
        wq = _linear_w(lk[0], HID, HID) * (1.0 / math.sqrt(hd))
        wk = _linear_w(lk[1], HID, HID)
        wv = _linear_w(lk[2], HID, HID)
        wo = _linear_w(lk[3], HID, HID)      # (in = heads concat, out = H)
        w1 = _linear_w(lk[4], HID, PF_DIM)
        w2 = _linear_w(lk[5], PF_DIM, HID)
        layers.append({
            "wqkv": jnp.concatenate([wq, wk, wv], axis=1),   # (H, 3H) fused QKV
            "bqkv": jnp.zeros((1, 3 * HID), jnp.float32),
            "wo": wo,
            "bo": jnp.zeros((1, HID), jnp.float32),
            "ln1_g": jnp.ones((1, HID), jnp.float32),
            "ln1_b": jnp.zeros((1, HID), jnp.float32),
            "w1": w1, "b1": jnp.zeros((1, PF_DIM), jnp.float32),
            "w2": w2, "b2": jnp.zeros((1, HID), jnp.float32),
            "ln2_g": jnp.ones((1, HID), jnp.float32),
            "ln2_b": jnp.zeros((1, HID), jnp.float32),
        })
    # stack all per-layer params with a leading layer axis (VMEM-resident)
    stacked = {k: jnp.stack([lp[k] for lp in layers], axis=0) for k in layers[0]}
    # fold the sqrt(hid_dim) embedding scale into the token table (init-time)
    return {"tok_emb_scaled": tok_emb * math.sqrt(HID), "pos_emb": pos_emb, **stacked}


_WEIGHT_ORDER = ["wqkv", "bqkv", "wo", "bo", "ln1_g", "ln1_b",
                 "w1", "b1", "w2", "b2", "ln2_g", "ln2_b"]


# ---------------- encoder forward ----------------
def encoder_forward(src_tokens, src_mask, params):
    B, S = src_tokens.shape
    H = HID
    T = B * S

    # embedding gather in plain JAX (no one-hot matmul / over-DMA of the table)
    tok = jnp.take(params["tok_emb_scaled"], src_tokens.reshape(-1), axis=0)   # (T, H)
    pos = jnp.broadcast_to(params["pos_emb"][:S][None, :, :],
                           (B, S, H)).reshape(T, H)                            # (T, H)

    # additive attention bias over the flat token axis: forbids cross-batch
    # attention (block-diagonal) and masked-out (pad) keys. Built once per
    # forward; replaces the per-(layer,batch) compare/select in the kernel.
    tok_batch = jnp.repeat(jnp.arange(B, dtype=jnp.int32), S)                  # (T,)
    same_batch = tok_batch[:, None] == tok_batch[None, :]                      # (T, T)
    key_keep = src_mask.reshape(1, T) > 0                                      # (1, T)
    attn_bias = jnp.where(same_batch & key_keep, 0.0, -1e10).astype(jnp.float32)

    weights = [params[n] for n in _WEIGHT_ORDER]
    vspec = pl.BlockSpec(memory_space=pltpu.MemorySpace.VMEM)

    # advisory cost hint: the kernel is overhead/latency bound at these shapes
    flops = 2 * N_LAYERS * T * (3 * H * H + 2 * T * H + H * H + 2 * H * PF_DIM)
    transcendentals = N_LAYERS * (N_HEADS * T * T + 4 * T)
    bytes_accessed = 4 * (int(tok.size) + int(pos.size) + int(attn_bias.size)
                          + T * H + sum(int(w.size) for w in weights))

    kernel = functools.partial(_fused_encoder_kernel,
                               n_layers=N_LAYERS, n_heads=N_HEADS)
    out = pl.pallas_call(
        kernel,
        out_shape=jax.ShapeDtypeStruct((T, H), jnp.float32),
        in_specs=[vspec] * (3 + len(weights)),
        out_specs=vspec,
        cost_estimate=pl.CostEstimate(flops=int(flops),
                                      transcendentals=int(transcendentals),
                                      bytes_accessed=int(bytes_accessed)),
    )(tok, pos, attn_bias, *weights)
    return out.reshape(B, S, H)


if __name__ == "__main__":
    key = jax.random.PRNGKey(0)
    pkey, tkey = jax.random.split(key)
    params = init_params(pkey)

    # deterministic token ids; last two positions of batch element 1 are padding
    src = jax.random.randint(tkey, (BATCH, SEQ), 1, VOCAB, dtype=jnp.int32)
    src = src.at[1, -2:].set(PAD_IDX)
    src_mask = (src != PAD_IDX).astype(jnp.float32)                            # (B, S)

    fwd = jax.jit(encoder_forward)
    out = fwd(src, src_mask, params)
    out = jax.block_until_ready(out)
    assert out.shape == (BATCH, SEQ, HID)
    assert bool(jnp.all(jnp.isfinite(out)))
    print("KERNEL_OK")
</pallas_src>

<mosaic_0001>
module attributes {stable_mosaic.version = 11 : i64} {
  func.func @_fused_encoder_kernel(%arg0: memref<16x32xf32, #tpu.memory_space<vmem>>, %arg1: memref<16x32xf32, #tpu.memory_space<vmem>>, %arg2: memref<16x16xf32, #tpu.memory_space<vmem>>, %arg3: memref<2x32x96xf32, #tpu.memory_space<vmem>>, %arg4: memref<2x1x96xf32, #tpu.memory_space<vmem>>, %arg5: memref<2x32x32xf32, #tpu.memory_space<vmem>>, %arg6: memref<2x1x32xf32, #tpu.memory_space<vmem>>, %arg7: memref<2x1x32xf32, #tpu.memory_space<vmem>>, %arg8: memref<2x1x32xf32, #tpu.memory_space<vmem>>, %arg9: memref<2x32x64xf32, #tpu.memory_space<vmem>>, %arg10: memref<2x1x64xf32, #tpu.memory_space<vmem>>, %arg11: memref<2x64x32xf32, #tpu.memory_space<vmem>>, %arg12: memref<2x1x32xf32, #tpu.memory_space<vmem>>, %arg13: memref<2x1x32xf32, #tpu.memory_space<vmem>>, %arg14: memref<2x1x32xf32, #tpu.memory_space<vmem>>, %arg15: memref<16x32xf32, #tpu.memory_space<vmem>>) attributes {dimension_semantics = [], scalar_prefetch = 0 : i64, scratch_operands = 0 : i64, tpu.core_type = #tpu.core_type<tc>} {
    %c0 = arith.constant 0 : index
    %c0_0 = arith.constant 0 : index
    %0 = vector.load %arg0[%c0, %c0_0] : memref<16x32xf32, #tpu.memory_space<vmem>>, vector<16x32xf32>
    %c0_1 = arith.constant 0 : index
    %c0_2 = arith.constant 0 : index
    %1 = vector.load %arg1[%c0_1, %c0_2] : memref<16x32xf32, #tpu.memory_space<vmem>>, vector<16x32xf32>
    %2 = arith.addf %0, %1 : vector<16x32xf32>
    %c0_3 = arith.constant 0 : index
    %c0_4 = arith.constant 0 : index
    %3 = vector.load %arg2[%c0_3, %c0_4] : memref<16x16xf32, #tpu.memory_space<vmem>>, vector<16x16xf32>
    %4 = vector.shape_cast %3 : vector<16x16xf32> to vector<1x16x16xf32>
    %5 = vector.broadcast %4 : vector<1x16x16xf32> to vector<4x16x16xf32>
    %c0_5 = arith.constant 0 : index
    %c0_6 = arith.constant 0 : index
    %c0_7 = arith.constant 0 : index
    %6 = vector.load %arg3[%c0_5, %c0_6, %c0_7] : memref<2x32x96xf32, #tpu.memory_space<vmem>>, vector<1x32x96xf32>
    %7 = vector.shape_cast %6 : vector<1x32x96xf32> to vector<32x96xf32>
    %cst = arith.constant dense<0.000000e+00> : vector<16x96xf32>
    %8 = tpu.matmul %2, %7, %cst {dimension_numbers = #tpu.dot_dimension_numbers<[1], [0], [0], [1], [0, 0, 1, 1], [], []>} : vector<16x32xf32>, vector<32x96xf32>, vector<16x96xf32> -> vector<16x96xf32>
    %c0_8 = arith.constant 0 : index
    %c0_9 = arith.constant 0 : index
    %c0_10 = arith.constant 0 : index
    %9 = vector.load %arg4[%c0_8, %c0_9, %c0_10] : memref<2x1x96xf32, #tpu.memory_space<vmem>>, vector<1x1x96xf32>
    %10 = vector.shape_cast %9 : vector<1x1x96xf32> to vector<1x96xf32>
    %11 = vector.broadcast %10 : vector<1x96xf32> to vector<16x96xf32>
    %12 = arith.addf %8, %11 : vector<16x96xf32>
    %13 = vector.extract_strided_slice %12 {offsets = [0, 0], sizes = [16, 8], strides = [1, 1]} : vector<16x96xf32> to vector<16x8xf32>
    %14 = vector.extract_strided_slice %12 {offsets = [0, 8], sizes = [16, 8], strides = [1, 1]} : vector<16x96xf32> to vector<16x8xf32>
    %15 = vector.extract_strided_slice %12 {offsets = [0, 16], sizes = [16, 8], strides = [1, 1]} : vector<16x96xf32> to vector<16x8xf32>
    %16 = vector.extract_strided_slice %12 {offsets = [0, 24], sizes = [16, 8], strides = [1, 1]} : vector<16x96xf32> to vector<16x8xf32>
    %17 = vector.shape_cast %13 : vector<16x8xf32> to vector<1x16x8xf32>
    %18 = vector.shape_cast %14 : vector<16x8xf32> to vector<1x16x8xf32>
    %19 = vector.shape_cast %15 : vector<16x8xf32> to vector<1x16x8xf32>
    %20 = vector.shape_cast %16 : vector<16x8xf32> to vector<1x16x8xf32>
    %21 = tpu.concatenate %17, %18, %19, %20 in 0 : vector<1x16x8xf32>, vector<1x16x8xf32>, vector<1x16x8xf32>, vector<1x16x8xf32> -> vector<4x16x8xf32>
    %22 = vector.extract_strided_slice %12 {offsets = [0, 32], sizes = [16, 8], strides = [1, 1]} : vector<16x96xf32> to vector<16x8xf32>
    %23 = vector.extract_strided_slice %12 {offsets = [0, 40], sizes = [16, 8], strides = [1, 1]} : vector<16x96xf32> to vector<16x8xf32>
    %24 = vector.extract_strided_slice %12 {offsets = [0, 48], sizes = [16, 8], strides = [1, 1]} : vector<16x96xf32> to vector<16x8xf32>
    %25 = vector.extract_strided_slice %12 {offsets = [0, 56], sizes = [16, 8], strides = [1, 1]} : vector<16x96xf32> to vector<16x8xf32>
    %26 = vector.shape_cast %22 : vector<16x8xf32> to vector<1x16x8xf32>
    %27 = vector.shape_cast %23 : vector<16x8xf32> to vector<1x16x8xf32>
    %28 = vector.shape_cast %24 : vector<16x8xf32> to vector<1x16x8xf32>
    %29 = vector.shape_cast %25 : vector<16x8xf32> to vector<1x16x8xf32>
    %30 = tpu.concatenate %26, %27, %28, %29 in 0 : vector<1x16x8xf32>, vector<1x16x8xf32>, vector<1x16x8xf32>, vector<1x16x8xf32> -> vector<4x16x8xf32>
    %31 = vector.extract_strided_slice %12 {offsets = [0, 64], sizes = [16, 8], strides = [1, 1]} : vector<16x96xf32> to vector<16x8xf32>
    %32 = vector.extract_strided_slice %12 {offsets = [0, 72], sizes = [16, 8], strides = [1, 1]} : vector<16x96xf32> to vector<16x8xf32>
    %33 = vector.extract_strided_slice %12 {offsets = [0, 80], sizes = [16, 8], strides = [1, 1]} : vector<16x96xf32> to vector<16x8xf32>
    %34 = vector.extract_strided_slice %12 {offsets = [0, 88], sizes = [16, 8], strides = [1, 1]} : vector<16x96xf32> to vector<16x8xf32>
    %35 = vector.shape_cast %31 : vector<16x8xf32> to vector<1x16x8xf32>
    %36 = vector.shape_cast %32 : vector<16x8xf32> to vector<1x16x8xf32>
    %37 = vector.shape_cast %33 : vector<16x8xf32> to vector<1x16x8xf32>
    %38 = vector.shape_cast %34 : vector<16x8xf32> to vector<1x16x8xf32>
    %39 = tpu.concatenate %35, %36, %37, %38 in 0 : vector<1x16x8xf32>, vector<1x16x8xf32>, vector<1x16x8xf32>, vector<1x16x8xf32> -> vector<4x16x8xf32>
    "tpu.trace_start"() <{level = 10 : i32, message = "htd,hkd->htk"}> : () -> ()
    %cst_11 = arith.constant dense<0.000000e+00> : vector<4x16x16xf32>
    %40 = tpu.matmul %21, %30, %cst_11 {dimension_numbers = #tpu.dot_dimension_numbers<[2], [2], [1], [1], [0, 0, 0, 1, 1, 1], [0], [0]>} : vector<4x16x8xf32>, vector<4x16x8xf32>, vector<4x16x16xf32> -> vector<4x16x16xf32>
    "tpu.trace_stop"() : () -> ()
    %41 = arith.addf %40, %5 : vector<4x16x16xf32>
    %cst_12 = arith.constant dense<0xFF800000> : vector<4x16xf32>
    %42 = vector.multi_reduction <maximumf>, %41, %cst_12 [2] : vector<4x16x16xf32> to vector<4x16xf32>
    %43 = vector.shape_cast %42 : vector<4x16xf32> to vector<4x16x1xf32>
    %44 = vector.broadcast %43 : vector<4x16x1xf32> to vector<4x16x16xf32>
    %45 = arith.subf %41, %44 : vector<4x16x16xf32>
    %46 = math.exp %45 : vector<4x16x16xf32>
    %cst_13 = arith.constant dense<0.000000e+00> : vector<4x16xf32>
    %47 = vector.multi_reduction <add>, %46, %cst_13 [2] : vector<4x16x16xf32> to vector<4x16xf32>
    %48 = vector.shape_cast %47 : vector<4x16xf32> to vector<4x16x1xf32>
    %49 = tpu.reciprocal %48 {approx = true} : vector<4x16x1xf32> -> vector<4x16x1xf32>
    %50 = vector.broadcast %49 : vector<4x16x1xf32> to vector<4x16x16xf32>
    %51 = arith.mulf %46, %50 : vector<4x16x16xf32>
    "tpu.trace_start"() <{level = 10 : i32, message = "htk,hkd->htd"}> : () -> ()
    %cst_14 = arith.constant dense<0.000000e+00> : vector<4x16x8xf32>
    %52 = tpu.matmul %51, %39, %cst_14 {dimension_numbers = #tpu.dot_dimension_numbers<[2], [1], [1], [2], [0, 0, 0, 1, 1, 2], [0], [0]>} : vector<4x16x16xf32>, vector<4x16x8xf32>, vector<4x16x8xf32> -> vector<4x16x8xf32>
    "tpu.trace_stop"() : () -> ()
    %53 = vector.extract_strided_slice %52 {offsets = [0, 0, 0], sizes = [1, 16, 8], strides = [1, 1, 1]} : vector<4x16x8xf32> to vector<1x16x8xf32>
    %54 = vector.shape_cast %53 : vector<1x16x8xf32> to vector<16x8xf32>
    %55 = vector.extract_strided_slice %52 {offsets = [1, 0, 0], sizes = [1, 16, 8], strides = [1, 1, 1]} : vector<4x16x8xf32> to vector<1x16x8xf32>
    %56 = vector.shape_cast %55 : vector<1x16x8xf32> to vector<16x8xf32>
    %57 = vector.extract_strided_slice %52 {offsets = [2, 0, 0], sizes = [1, 16, 8], strides = [1, 1, 1]} : vector<4x16x8xf32> to vector<1x16x8xf32>
    %58 = vector.shape_cast %57 : vector<1x16x8xf32> to vector<16x8xf32>
    %59 = vector.extract_strided_slice %52 {offsets = [3, 0, 0], sizes = [1, 16, 8], strides = [1, 1, 1]} : vector<4x16x8xf32> to vector<1x16x8xf32>
    %60 = vector.shape_cast %59 : vector<1x16x8xf32> to vector<16x8xf32>
    %61 = tpu.concatenate %54, %56, %58, %60 in 1 : vector<16x8xf32>, vector<16x8xf32>, vector<16x8xf32>, vector<16x8xf32> -> vector<16x32xf32>
    %c0_15 = arith.constant 0 : index
    %c0_16 = arith.constant 0 : index
    %c0_17 = arith.constant 0 : index
    %62 = vector.load %arg5[%c0_15, %c0_16, %c0_17] : memref<2x32x32xf32, #tpu.memory_space<vmem>>, vector<1x32x32xf32>
    %63 = vector.shape_cast %62 : vector<1x32x32xf32> to vector<32x32xf32>
    %cst_18 = arith.constant dense<0.000000e+00> : vector<16x32xf32>
    %64 = tpu.matmul %61, %63, %cst_18 {dimension_numbers = #tpu.dot_dimension_numbers<[1], [0], [0], [1], [0, 0, 1, 1], [], []>} : vector<16x32xf32>, vector<32x32xf32>, vector<16x32xf32> -> vector<16x32xf32>
    %c0_19 = arith.constant 0 : index
    %c0_20 = arith.constant 0 : index
    %c0_21 = arith.constant 0 : index
    %65 = vector.load %arg6[%c0_19, %c0_20, %c0_21] : memref<2x1x32xf32, #tpu.memory_space<vmem>>, vector<1x1x32xf32>
    %66 = vector.shape_cast %65 : vector<1x1x32xf32> to vector<1x32xf32>
    %67 = vector.broadcast %66 : vector<1x32xf32> to vector<16x32xf32>
    %68 = arith.addf %64, %67 : vector<16x32xf32>
    %69 = arith.addf %2, %68 : vector<16x32xf32>
    %c0_22 = arith.constant 0 : index
    %c0_23 = arith.constant 0 : index
    %c0_24 = arith.constant 0 : index
    %70 = vector.load %arg7[%c0_22, %c0_23, %c0_24] : memref<2x1x32xf32, #tpu.memory_space<vmem>>, vector<1x1x32xf32>
    %71 = vector.shape_cast %70 : vector<1x1x32xf32> to vector<1x32xf32>
    %c0_25 = arith.constant 0 : index
    %c0_26 = arith.constant 0 : index
    %c0_27 = arith.constant 0 : index
    %72 = vector.load %arg8[%c0_25, %c0_26, %c0_27] : memref<2x1x32xf32, #tpu.memory_space<vmem>>, vector<1x1x32xf32>
    %73 = vector.shape_cast %72 : vector<1x1x32xf32> to vector<1x32xf32>
    %cst_28 = arith.constant dense<0.000000e+00> : vector<16xf32>
    %74 = vector.multi_reduction <add>, %69, %cst_28 [1] : vector<16x32xf32> to vector<16xf32>
    %75 = vector.shape_cast %74 : vector<16xf32> to vector<16x1xf32>
    %cst_29 = arith.constant 3.200000e+01 : f32
    %76 = vector.broadcast %cst_29 : f32 to vector<16x1xf32>
    %77 = arith.divf %75, %76 : vector<16x1xf32>
    %78 = vector.broadcast %77 : vector<16x1xf32> to vector<16x32xf32>
    %79 = arith.subf %69, %78 : vector<16x32xf32>
    %80 = arith.mulf %79, %79 : vector<16x32xf32>
    %cst_30 = arith.constant dense<0.000000e+00> : vector<16xf32>
    %81 = vector.multi_reduction <add>, %80, %cst_30 [1] : vector<16x32xf32> to vector<16xf32>
    %82 = vector.shape_cast %81 : vector<16xf32> to vector<16x1xf32>
    %cst_31 = arith.constant 3.200000e+01 : f32
    %83 = vector.broadcast %cst_31 : f32 to vector<16x1xf32>
    %84 = arith.divf %82, %83 : vector<16x1xf32>
    %85 = vector.broadcast %77 : vector<16x1xf32> to vector<16x32xf32>
    %86 = arith.subf %69, %85 : vector<16x32xf32>
    %cst_32 = arith.constant 9.99999974E-6 : f32
    %87 = vector.broadcast %cst_32 : f32 to vector<16x1xf32>
    %88 = arith.addf %84, %87 : vector<16x1xf32>
    %89 = math.rsqrt %88 : vector<16x1xf32>
    %90 = vector.broadcast %89 : vector<16x1xf32> to vector<16x32xf32>
    %91 = arith.mulf %86, %90 : vector<16x32xf32>
    %92 = vector.broadcast %71 : vector<1x32xf32> to vector<16x32xf32>
    %93 = arith.mulf %91, %92 : vector<16x32xf32>
    %94 = vector.broadcast %73 : vector<1x32xf32> to vector<16x32xf32>
    %95 = arith.addf %93, %94 : vector<16x32xf32>
    %c0_33 = arith.constant 0 : index
    %c0_34 = arith.constant 0 : index
    %c0_35 = arith.constant 0 : index
    %96 = vector.load %arg9[%c0_33, %c0_34, %c0_35] : memref<2x32x64xf32, #tpu.memory_space<vmem>>, vector<1x32x64xf32>
    %97 = vector.shape_cast %96 : vector<1x32x64xf32> to vector<32x64xf32>
    %cst_36 = arith.constant dense<0.000000e+00> : vector<16x64xf32>
    %98 = tpu.matmul %95, %97, %cst_36 {dimension_numbers = #tpu.dot_dimension_numbers<[1], [0], [0], [1], [0, 0, 1, 1], [], []>} : vector<16x32xf32>, vector<32x64xf32>, vector<16x64xf32> -> vector<16x64xf32>
    %c0_37 = arith.constant 0 : index
    %c0_38 = arith.constant 0 : index
    %c0_39 = arith.constant 0 : index
    %99 = vector.load %arg10[%c0_37, %c0_38, %c0_39] : memref<2x1x64xf32, #tpu.memory_space<vmem>>, vector<1x1x64xf32>
    %100 = vector.shape_cast %99 : vector<1x1x64xf32> to vector<1x64xf32>
    %101 = vector.broadcast %100 : vector<1x64xf32> to vector<16x64xf32>
    %102 = arith.addf %98, %101 : vector<16x64xf32>
    %cst_40 = arith.constant 0.000000e+00 : f32
    %103 = vector.broadcast %cst_40 : f32 to vector<16x64xf32>
    %104 = arith.maximumf %102, %103 : vector<16x64xf32>
    %c0_41 = arith.constant 0 : index
    %c0_42 = arith.constant 0 : index
    %c0_43 = arith.constant 0 : index
    %105 = vector.load %arg11[%c0_41, %c0_42, %c0_43] : memref<2x64x32xf32, #tpu.memory_space<vmem>>, vector<1x64x32xf32>
    %106 = vector.shape_cast %105 : vector<1x64x32xf32> to vector<64x32xf32>
    %cst_44 = arith.constant dense<0.000000e+00> : vector<16x32xf32>
    %107 = tpu.matmul %104, %106, %cst_44 {dimension_numbers = #tpu.dot_dimension_numbers<[1], [0], [0], [1], [0, 0, 1, 1], [], []>} : vector<16x64xf32>, vector<64x32xf32>, vector<16x32xf32> -> vector<16x32xf32>
    %c0_45 = arith.constant 0 : index
    %c0_46 = arith.constant 0 : index
    %c0_47 = arith.constant 0 : index
    %108 = vector.load %arg12[%c0_45, %c0_46, %c0_47] : memref<2x1x32xf32, #tpu.memory_space<vmem>>, vector<1x1x32xf32>
    %109 = vector.shape_cast %108 : vector<1x1x32xf32> to vector<1x32xf32>
    %110 = vector.broadcast %109 : vector<1x32xf32> to vector<16x32xf32>
    %111 = arith.addf %107, %110 : vector<16x32xf32>
    %112 = arith.addf %95, %111 : vector<16x32xf32>
    %c0_48 = arith.constant 0 : index
    %c0_49 = arith.constant 0 : index
    %c0_50 = arith.constant 0 : index
    %113 = vector.load %arg13[%c0_48, %c0_49, %c0_50] : memref<2x1x32xf32, #tpu.memory_space<vmem>>, vector<1x1x32xf32>
    %114 = vector.shape_cast %113 : vector<1x1x32xf32> to vector<1x32xf32>
    %c0_51 = arith.constant 0 : index
    %c0_52 = arith.constant 0 : index
    %c0_53 = arith.constant 0 : index
    %115 = vector.load %arg14[%c0_51, %c0_52, %c0_53] : memref<2x1x32xf32, #tpu.memory_space<vmem>>, vector<1x1x32xf32>
    %116 = vector.shape_cast %115 : vector<1x1x32xf32> to vector<1x32xf32>
    %cst_54 = arith.constant dense<0.000000e+00> : vector<16xf32>
    %117 = vector.multi_reduction <add>, %112, %cst_54 [1] : vector<16x32xf32> to vector<16xf32>
    %118 = vector.shape_cast %117 : vector<16xf32> to vector<16x1xf32>
    %cst_55 = arith.constant 3.200000e+01 : f32
    %119 = vector.broadcast %cst_55 : f32 to vector<16x1xf32>
    %120 = arith.divf %118, %119 : vector<16x1xf32>
    %121 = vector.broadcast %120 : vector<16x1xf32> to vector<16x32xf32>
    %122 = arith.subf %112, %121 : vector<16x32xf32>
    %123 = arith.mulf %122, %122 : vector<16x32xf32>
    %cst_56 = arith.constant dense<0.000000e+00> : vector<16xf32>
    %124 = vector.multi_reduction <add>, %123, %cst_56 [1] : vector<16x32xf32> to vector<16xf32>
    %125 = vector.shape_cast %124 : vector<16xf32> to vector<16x1xf32>
    %cst_57 = arith.constant 3.200000e+01 : f32
    %126 = vector.broadcast %cst_57 : f32 to vector<16x1xf32>
    %127 = arith.divf %125, %126 : vector<16x1xf32>
    %128 = vector.broadcast %120 : vector<16x1xf32> to vector<16x32xf32>
    %129 = arith.subf %112, %128 : vector<16x32xf32>
    %cst_58 = arith.constant 9.99999974E-6 : f32
    %130 = vector.broadcast %cst_58 : f32 to vector<16x1xf32>
    %131 = arith.addf %127, %130 : vector<16x1xf32>
    %132 = math.rsqrt %131 : vector<16x1xf32>
    %133 = vector.broadcast %132 : vector<16x1xf32> to vector<16x32xf32>
    %134 = arith.mulf %129, %133 : vector<16x32xf32>
    %135 = vector.broadcast %114 : vector<1x32xf32> to vector<16x32xf32>
    %136 = arith.mulf %134, %135 : vector<16x32xf32>
    %137 = vector.broadcast %116 : vector<1x32xf32> to vector<16x32xf32>
    %138 = arith.addf %136, %137 : vector<16x32xf32>
    %c1 = arith.constant 1 : index
    %c0_59 = arith.constant 0 : index
    %c0_60 = arith.constant 0 : index
    %139 = vector.load %arg3[%c1, %c0_59, %c0_60] : memref<2x32x96xf32, #tpu.memory_space<vmem>>, vector<1x32x96xf32>
    %140 = vector.shape_cast %139 : vector<1x32x96xf32> to vector<32x96xf32>
    %cst_61 = arith.constant dense<0.000000e+00> : vector<16x96xf32>
    %141 = tpu.matmul %138, %140, %cst_61 {dimension_numbers = #tpu.dot_dimension_numbers<[1], [0], [0], [1], [0, 0, 1, 1], [], []>} : vector<16x32xf32>, vector<32x96xf32>, vector<16x96xf32> -> vector<16x96xf32>
    %c1_62 = arith.constant 1 : index
    %c0_63 = arith.constant 0 : index
    %c0_64 = arith.constant 0 : index
    %142 = vector.load %arg4[%c1_62, %c0_63, %c0_64] : memref<2x1x96xf32, #tpu.memory_space<vmem>>, vector<1x1x96xf32>
    %143 = vector.shape_cast %142 : vector<1x1x96xf32> to vector<1x96xf32>
    %144 = vector.broadcast %143 : vector<1x96xf32> to vector<16x96xf32>
    %145 = arith.addf %141, %144 : vector<16x96xf32>
    %146 = vector.extract_strided_slice %145 {offsets = [0, 0], sizes = [16, 8], strides = [1, 1]} : vector<16x96xf32> to vector<16x8xf32>
    %147 = vector.extract_strided_slice %145 {offsets = [0, 8], sizes = [16, 8], strides = [1, 1]} : vector<16x96xf32> to vector<16x8xf32>
    %148 = vector.extract_strided_slice %145 {offsets = [0, 16], sizes = [16, 8], strides = [1, 1]} : vector<16x96xf32> to vector<16x8xf32>
    %149 = vector.extract_strided_slice %145 {offsets = [0, 24], sizes = [16, 8], strides = [1, 1]} : vector<16x96xf32> to vector<16x8xf32>
    %150 = vector.shape_cast %146 : vector<16x8xf32> to vector<1x16x8xf32>
    %151 = vector.shape_cast %147 : vector<16x8xf32> to vector<1x16x8xf32>
    %152 = vector.shape_cast %148 : vector<16x8xf32> to vector<1x16x8xf32>
    %153 = vector.shape_cast %149 : vector<16x8xf32> to vector<1x16x8xf32>
    %154 = tpu.concatenate %150, %151, %152, %153 in 0 : vector<1x16x8xf32>, vector<1x16x8xf32>, vector<1x16x8xf32>, vector<1x16x8xf32> -> vector<4x16x8xf32>
    %155 = vector.extract_strided_slice %145 {offsets = [0, 32], sizes = [16, 8], strides = [1, 1]} : vector<16x96xf32> to vector<16x8xf32>
    %156 = vector.extract_strided_slice %145 {offsets = [0, 40], sizes = [16, 8], strides = [1, 1]} : vector<16x96xf32> to vector<16x8xf32>
    %157 = vector.extract_strided_slice %145 {offsets = [0, 48], sizes = [16, 8], strides = [1, 1]} : vector<16x96xf32> to vector<16x8xf32>
    %158 = vector.extract_strided_slice %145 {offsets = [0, 56], sizes = [16, 8], strides = [1, 1]} : vector<16x96xf32> to vector<16x8xf32>
    %159 = vector.shape_cast %155 : vector<16x8xf32> to vector<1x16x8xf32>
    %160 = vector.shape_cast %156 : vector<16x8xf32> to vector<1x16x8xf32>
    %161 = vector.shape_cast %157 : vector<16x8xf32> to vector<1x16x8xf32>
    %162 = vector.shape_cast %158 : vector<16x8xf32> to vector<1x16x8xf32>
    %163 = tpu.concatenate %159, %160, %161, %162 in 0 : vector<1x16x8xf32>, vector<1x16x8xf32>, vector<1x16x8xf32>, vector<1x16x8xf32> -> vector<4x16x8xf32>
    %164 = vector.extract_strided_slice %145 {offsets = [0, 64], sizes = [16, 8], strides = [1, 1]} : vector<16x96xf32> to vector<16x8xf32>
    %165 = vector.extract_strided_slice %145 {offsets = [0, 72], sizes = [16, 8], strides = [1, 1]} : vector<16x96xf32> to vector<16x8xf32>
    %166 = vector.extract_strided_slice %145 {offsets = [0, 80], sizes = [16, 8], strides = [1, 1]} : vector<16x96xf32> to vector<16x8xf32>
    %167 = vector.extract_strided_slice %145 {offsets = [0, 88], sizes = [16, 8], strides = [1, 1]} : vector<16x96xf32> to vector<16x8xf32>
    %168 = vector.shape_cast %164 : vector<16x8xf32> to vector<1x16x8xf32>
    %169 = vector.shape_cast %165 : vector<16x8xf32> to vector<1x16x8xf32>
    %170 = vector.shape_cast %166 : vector<16x8xf32> to vector<1x16x8xf32>
    %171 = vector.shape_cast %167 : vector<16x8xf32> to vector<1x16x8xf32>
    %172 = tpu.concatenate %168, %169, %170, %171 in 0 : vector<1x16x8xf32>, vector<1x16x8xf32>, vector<1x16x8xf32>, vector<1x16x8xf32> -> vector<4x16x8xf32>
    "tpu.trace_start"() <{level = 10 : i32, message = "htd,hkd->htk"}> : () -> ()
    %cst_65 = arith.constant dense<0.000000e+00> : vector<4x16x16xf32>
    %173 = tpu.matmul %154, %163, %cst_65 {dimension_numbers = #tpu.dot_dimension_numbers<[2], [2], [1], [1], [0, 0, 0, 1, 1, 1], [0], [0]>} : vector<4x16x8xf32>, vector<4x16x8xf32>, vector<4x16x16xf32> -> vector<4x16x16xf32>
    "tpu.trace_stop"() : () -> ()
    %174 = arith.addf %173, %5 : vector<4x16x16xf32>
    %cst_66 = arith.constant dense<0xFF800000> : vector<4x16xf32>
    %175 = vector.multi_reduction <maximumf>, %174, %cst_66 [2] : vector<4x16x16xf32> to vector<4x16xf32>
    %176 = vector.shape_cast %175 : vector<4x16xf32> to vector<4x16x1xf32>
    %177 = vector.broadcast %176 : vector<4x16x1xf32> to vector<4x16x16xf32>
    %178 = arith.subf %174, %177 : vector<4x16x16xf32>
    %179 = math.exp %178 : vector<4x16x16xf32>
    %cst_67 = arith.constant dense<0.000000e+00> : vector<4x16xf32>
    %180 = vector.multi_reduction <add>, %179, %cst_67 [2] : vector<4x16x16xf32> to vector<4x16xf32>
    %181 = vector.shape_cast %180 : vector<4x16xf32> to vector<4x16x1xf32>
    %182 = tpu.reciprocal %181 {approx = true} : vector<4x16x1xf32> -> vector<4x16x1xf32>
    %183 = vector.broadcast %182 : vector<4x16x1xf32> to vector<4x16x16xf32>
    %184 = arith.mulf %179, %183 : vector<4x16x16xf32>
    "tpu.trace_start"() <{level = 10 : i32, message = "htk,hkd->htd"}> : () -> ()
    %cst_68 = arith.constant dense<0.000000e+00> : vector<4x16x8xf32>
    %185 = tpu.matmul %184, %172, %cst_68 {dimension_numbers = #tpu.dot_dimension_numbers<[2], [1], [1], [2], [0, 0, 0, 1, 1, 2], [0], [0]>} : vector<4x16x16xf32>, vector<4x16x8xf32>, vector<4x16x8xf32> -> vector<4x16x8xf32>
    "tpu.trace_stop"() : () -> ()
    %186 = vector.extract_strided_slice %185 {offsets = [0, 0, 0], sizes = [1, 16, 8], strides = [1, 1, 1]} : vector<4x16x8xf32> to vector<1x16x8xf32>
    %187 = vector.shape_cast %186 : vector<1x16x8xf32> to vector<16x8xf32>
    %188 = vector.extract_strided_slice %185 {offsets = [1, 0, 0], sizes = [1, 16, 8], strides = [1, 1, 1]} : vector<4x16x8xf32> to vector<1x16x8xf32>
    %189 = vector.shape_cast %188 : vector<1x16x8xf32> to vector<16x8xf32>
    %190 = vector.extract_strided_slice %185 {offsets = [2, 0, 0], sizes = [1, 16, 8], strides = [1, 1, 1]} : vector<4x16x8xf32> to vector<1x16x8xf32>
    %191 = vector.shape_cast %190 : vector<1x16x8xf32> to vector<16x8xf32>
    %192 = vector.extract_strided_slice %185 {offsets = [3, 0, 0], sizes = [1, 16, 8], strides = [1, 1, 1]} : vector<4x16x8xf32> to vector<1x16x8xf32>
    %193 = vector.shape_cast %192 : vector<1x16x8xf32> to vector<16x8xf32>
    %194 = tpu.concatenate %187, %189, %191, %193 in 1 : vector<16x8xf32>, vector<16x8xf32>, vector<16x8xf32>, vector<16x8xf32> -> vector<16x32xf32>
    %c1_69 = arith.constant 1 : index
    %c0_70 = arith.constant 0 : index
    %c0_71 = arith.constant 0 : index
    %195 = vector.load %arg5[%c1_69, %c0_70, %c0_71] : memref<2x32x32xf32, #tpu.memory_space<vmem>>, vector<1x32x32xf32>
    %196 = vector.shape_cast %195 : vector<1x32x32xf32> to vector<32x32xf32>
    %cst_72 = arith.constant dense<0.000000e+00> : vector<16x32xf32>
    %197 = tpu.matmul %194, %196, %cst_72 {dimension_numbers = #tpu.dot_dimension_numbers<[1], [0], [0], [1], [0, 0, 1, 1], [], []>} : vector<16x32xf32>, vector<32x32xf32>, vector<16x32xf32> -> vector<16x32xf32>
    %c1_73 = arith.constant 1 : index
    %c0_74 = arith.constant 0 : index
    %c0_75 = arith.constant 0 : index
    %198 = vector.load %arg6[%c1_73, %c0_74, %c0_75] : memref<2x1x32xf32, #tpu.memory_space<vmem>>, vector<1x1x32xf32>
    %199 = vector.shape_cast %198 : vector<1x1x32xf32> to vector<1x32xf32>
    %200 = vector.broadcast %199 : vector<1x32xf32> to vector<16x32xf32>
    %201 = arith.addf %197, %200 : vector<16x32xf32>
    %202 = arith.addf %138, %201 : vector<16x32xf32>
    %c1_76 = arith.constant 1 : index
    %c0_77 = arith.constant 0 : index
    %c0_78 = arith.constant 0 : index
    %203 = vector.load %arg7[%c1_76, %c0_77, %c0_78] : memref<2x1x32xf32, #tpu.memory_space<vmem>>, vector<1x1x32xf32>
    %204 = vector.shape_cast %203 : vector<1x1x32xf32> to vector<1x32xf32>
    %c1_79 = arith.constant 1 : index
    %c0_80 = arith.constant 0 : index
    %c0_81 = arith.constant 0 : index
    %205 = vector.load %arg8[%c1_79, %c0_80, %c0_81] : memref<2x1x32xf32, #tpu.memory_space<vmem>>, vector<1x1x32xf32>
    %206 = vector.shape_cast %205 : vector<1x1x32xf32> to vector<1x32xf32>
    %cst_82 = arith.constant dense<0.000000e+00> : vector<16xf32>
    %207 = vector.multi_reduction <add>, %202, %cst_82 [1] : vector<16x32xf32> to vector<16xf32>
    %208 = vector.shape_cast %207 : vector<16xf32> to vector<16x1xf32>
    %cst_83 = arith.constant 3.200000e+01 : f32
    %209 = vector.broadcast %cst_83 : f32 to vector<16x1xf32>
    %210 = arith.divf %208, %209 : vector<16x1xf32>
    %211 = vector.broadcast %210 : vector<16x1xf32> to vector<16x32xf32>
    %212 = arith.subf %202, %211 : vector<16x32xf32>
    %213 = arith.mulf %212, %212 : vector<16x32xf32>
    %cst_84 = arith.constant dense<0.000000e+00> : vector<16xf32>
    %214 = vector.multi_reduction <add>, %213, %cst_84 [1] : vector<16x32xf32> to vector<16xf32>
    %215 = vector.shape_cast %214 : vector<16xf32> to vector<16x1xf32>
    %cst_85 = arith.constant 3.200000e+01 : f32
    %216 = vector.broadcast %cst_85 : f32 to vector<16x1xf32>
    %217 = arith.divf %215, %216 : vector<16x1xf32>
    %218 = vector.broadcast %210 : vector<16x1xf32> to vector<16x32xf32>
    %219 = arith.subf %202, %218 : vector<16x32xf32>
    %cst_86 = arith.constant 9.99999974E-6 : f32
    %220 = vector.broadcast %cst_86 : f32 to vector<16x1xf32>
    %221 = arith.addf %217, %220 : vector<16x1xf32>
    %222 = math.rsqrt %221 : vector<16x1xf32>
    %223 = vector.broadcast %222 : vector<16x1xf32> to vector<16x32xf32>
    %224 = arith.mulf %219, %223 : vector<16x32xf32>
    %225 = vector.broadcast %204 : vector<1x32xf32> to vector<16x32xf32>
    %226 = arith.mulf %224, %225 : vector<16x32xf32>
    %227 = vector.broadcast %206 : vector<1x32xf32> to vector<16x32xf32>
    %228 = arith.addf %226, %227 : vector<16x32xf32>
    %c1_87 = arith.constant 1 : index
    %c0_88 = arith.constant 0 : index
    %c0_89 = arith.constant 0 : index
    %229 = vector.load %arg9[%c1_87, %c0_88, %c0_89] : memref<2x32x64xf32, #tpu.memory_space<vmem>>, vector<1x32x64xf32>
    %230 = vector.shape_cast %229 : vector<1x32x64xf32> to vector<32x64xf32>
    %cst_90 = arith.constant dense<0.000000e+00> : vector<16x64xf32>
    %231 = tpu.matmul %228, %230, %cst_90 {dimension_numbers = #tpu.dot_dimension_numbers<[1], [0], [0], [1], [0, 0, 1, 1], [], []>} : vector<16x32xf32>, vector<32x64xf32>, vector<16x64xf32> -> vector<16x64xf32>
    %c1_91 = arith.constant 1 : index
    %c0_92 = arith.constant 0 : index
    %c0_93 = arith.constant 0 : index
    %232 = vector.load %arg10[%c1_91, %c0_92, %c0_93] : memref<2x1x64xf32, #tpu.memory_space<vmem>>, vector<1x1x64xf32>
    %233 = vector.shape_cast %232 : vector<1x1x64xf32> to vector<1x64xf32>
    %234 = vector.broadcast %233 : vector<1x64xf32> to vector<16x64xf32>
    %235 = arith.addf %231, %234 : vector<16x64xf32>
    %cst_94 = arith.constant 0.000000e+00 : f32
    %236 = vector.broadcast %cst_94 : f32 to vector<16x64xf32>
    %237 = arith.maximumf %235, %236 : vector<16x64xf32>
    %c1_95 = arith.constant 1 : index
    %c0_96 = arith.constant 0 : index
    %c0_97 = arith.constant 0 : index
    %238 = vector.load %arg11[%c1_95, %c0_96, %c0_97] : memref<2x64x32xf32, #tpu.memory_space<vmem>>, vector<1x64x32xf32>
    %239 = vector.shape_cast %238 : vector<1x64x32xf32> to vector<64x32xf32>
    %cst_98 = arith.constant dense<0.000000e+00> : vector<16x32xf32>
    %240 = tpu.matmul %237, %239, %cst_98 {dimension_numbers = #tpu.dot_dimension_numbers<[1], [0], [0], [1], [0, 0, 1, 1], [], []>} : vector<16x64xf32>, vector<64x32xf32>, vector<16x32xf32> -> vector<16x32xf32>
    %c1_99 = arith.constant 1 : index
    %c0_100 = arith.constant 0 : index
    %c0_101 = arith.constant 0 : index
    %241 = vector.load %arg12[%c1_99, %c0_100, %c0_101] : memref<2x1x32xf32, #tpu.memory_space<vmem>>, vector<1x1x32xf32>
    %242 = vector.shape_cast %241 : vector<1x1x32xf32> to vector<1x32xf32>
    %243 = vector.broadcast %242 : vector<1x32xf32> to vector<16x32xf32>
    %244 = arith.addf %240, %243 : vector<16x32xf32>
    %245 = arith.addf %228, %244 : vector<16x32xf32>
    %c1_102 = arith.constant 1 : index
    %c0_103 = arith.constant 0 : index
    %c0_104 = arith.constant 0 : index
    %246 = vector.load %arg13[%c1_102, %c0_103, %c0_104] : memref<2x1x32xf32, #tpu.memory_space<vmem>>, vector<1x1x32xf32>
    %247 = vector.shape_cast %246 : vector<1x1x32xf32> to vector<1x32xf32>
    %c1_105 = arith.constant 1 : index
    %c0_106 = arith.constant 0 : index
    %c0_107 = arith.constant 0 : index
    %248 = vector.load %arg14[%c1_105, %c0_106, %c0_107] : memref<2x1x32xf32, #tpu.memory_space<vmem>>, vector<1x1x32xf32>
    %249 = vector.shape_cast %248 : vector<1x1x32xf32> to vector<1x32xf32>
    %cst_108 = arith.constant dense<0.000000e+00> : vector<16xf32>
    %250 = vector.multi_reduction <add>, %245, %cst_108 [1] : vector<16x32xf32> to vector<16xf32>
    %251 = vector.shape_cast %250 : vector<16xf32> to vector<16x1xf32>
    %cst_109 = arith.constant 3.200000e+01 : f32
    %252 = vector.broadcast %cst_109 : f32 to vector<16x1xf32>
    %253 = arith.divf %251, %252 : vector<16x1xf32>
    %254 = vector.broadcast %253 : vector<16x1xf32> to vector<16x32xf32>
    %255 = arith.subf %245, %254 : vector<16x32xf32>
    %256 = arith.mulf %255, %255 : vector<16x32xf32>
    %cst_110 = arith.constant dense<0.000000e+00> : vector<16xf32>
    %257 = vector.multi_reduction <add>, %256, %cst_110 [1] : vector<16x32xf32> to vector<16xf32>
    %258 = vector.shape_cast %257 : vector<16xf32> to vector<16x1xf32>
    %cst_111 = arith.constant 3.200000e+01 : f32
    %259 = vector.broadcast %cst_111 : f32 to vector<16x1xf32>
    %260 = arith.divf %258, %259 : vector<16x1xf32>
    %261 = vector.broadcast %253 : vector<16x1xf32> to vector<16x32xf32>
    %262 = arith.subf %245, %261 : vector<16x32xf32>
    %cst_112 = arith.constant 9.99999974E-6 : f32
    %263 = vector.broadcast %cst_112 : f32 to vector<16x1xf32>
    %264 = arith.addf %260, %263 : vector<16x1xf32>
    %265 = math.rsqrt %264 : vector<16x1xf32>
    %266 = vector.broadcast %265 : vector<16x1xf32> to vector<16x32xf32>
    %267 = arith.mulf %262, %266 : vector<16x32xf32>
    %268 = vector.broadcast %247 : vector<1x32xf32> to vector<16x32xf32>
    %269 = arith.mulf %267, %268 : vector<16x32xf32>
    %270 = vector.broadcast %249 : vector<1x32xf32> to vector<16x32xf32>
    %271 = arith.addf %269, %270 : vector<16x32xf32>
    %c0_113 = arith.constant 0 : index
    %c0_114 = arith.constant 0 : index
    %272 = vector.load %arg15[%c0_113, %c0_114] : memref<16x32xf32, #tpu.memory_space<vmem>>, vector<16x32xf32>
    tpu.vector_store %arg15[%c0_113, %c0_114], %271 {strides = array<i32>} : memref<16x32xf32, #tpu.memory_space<vmem>>, vector<16x32xf32>,
    return
  }
}

</mosaic_0001>

<bundles_post_ra>
// kernel: encoder_forward.1
= control target key start
LH: loop header
LB: loop body
LE: loop exit
PB: predicated region body
PF: predicated region fallthrough
CT: control target
= control target key end

     0   :  { %vm70_vm0 = vcmask 261120   ;;  %s4054_s0 = inlined_call_operand.vmem [shape: f32[16,32], index: 0, kind: input, shape index: {}]   ;;  %s4055_s1 = inlined_call_operand.vmem [shape: f32[16,32], index: 1, kind: input, shape index: {}]   ;;  %s4056_s2 = inlined_call_operand.vmem [shape: f32[16,16], index: 2, kind: input, shape index: {}]   ;;  %s4057_s3 = inlined_call_operand.vmem [shape: f32[2,32,96], index: 3, kind: input, shape index: {}]   ;;  %s4058_s4 = inlined_call_operand.vmem [shape: f32[2,1,96], index: 4, kind: input, shape index: {}]   ;;  %s4059_s5 = inlined_call_operand.vmem [shape: f32[2,32,32], index: 5, kind: input, shape index: {}]   ;;  %s4060_s6 = inlined_call_operand.vmem [shape: f32[2,1,32], index: 6, kind: input, shape index: {}]   ;;  %s4061_s7 = inlined_call_operand.vmem [shape: f32[2,1,32], index: 7, kind: input, shape index: {}]   ;;  %s4062_s8 = inlined_call_operand.vmem [shape: f32[2,1,32], index: 8, kind: input, shape index: {}]   ;;  %s4063_s9 = inlined_call_operand.vmem [shape: f32[2,32,64], index: 9, kind: input, shape index: {}]   ;;  %s4064_s10 = inlined_call_operand.vmem [shape: f32[2,1,64], index: 10, kind: input, shape index: {}]   ;;  %s4065_s11 = inlined_call_operand.vmem [shape: f32[2,64,32], index: 11, kind: input, shape index: {}]   ;;  %s4066_s12 = inlined_call_operand.vmem [shape: f32[2,1,32], index: 12, kind: input, shape index: {}]   ;;  %s4067_s13 = inlined_call_operand.vmem [shape: f32[2,1,32], index: 13, kind: input, shape index: {}]   ;;  %s4068_s14 = inlined_call_operand.vmem [shape: f32[2,1,32], index: 14, kind: input, shape index: {}]   ;;  %s4069_s15 = inlined_call_operand.hbm [shape: f32[16,32], index: 15, kind: output, shape index: {}]  }
   0x1   :  { %v59_v0 = vld [vmem:[%s4057_s3] sm:$0xff]  ;;  %v60_v1 = vld [vmem:[%s4057_s3 + $0x8] sm:$0xff]  ;;  %v61_v2 = vld [vmem:[%s4057_s3 + $0x10] sm:$0xff] }
   0x2   :  { %v3127_v3 = vpack.c.bf16 %v60_v1, %v59_v0  ;;  %v62_v4 = vld [vmem:[%s4057_s3 + $0x18] sm:$0xff]  ;;  %v51_v5 = vld [vmem:[%s4054_s0] sm:$0xff] }
   0x3   :  { %v53_v6 = vld [vmem:[%s4055_s1] sm:$0xff]  ;;  %v3131_v7 = vpack.c.bf16 %v62_v4, %v61_v2 }
   0x4   :  { %v3589_v8 = vadd.f32 %v53_v6, %v51_v5 }
   0x5   :  { %20 = vsyncpa [#allocation3], 0  ;;  %3128 = vmatprep.subr.bf16.mxu1 %v3127_v3  ;;  %v52_v9 = vld [vmem:[%s4054_s0 + $0x8] sm:$0xff]  ;;  %v2683_v12 = vld [vmem:[%s4058_s4] ss:$0 sm:$0xff]  ;;  %vm170_vm1 = vcmask 64512  }
   0x6   :  { %3130 = vmatpush3.bf16.msra.mxu1 %v3127_v3  ;;  %2919 = vmatprep.mubr.msk.f32.mxu1 %vm70_vm0, %v3589_v8  ;;  %v54_v10 = vld [vmem:[%s4055_s1 + $0x8] sm:$0xff]  ;;  %s3481_s0 = smov 112   ;;  %s3482_s1 = smov 120   ;;  %vm3632_vm2 = vmpackc.low %vm170_vm1, %vm170_vm1  ;;  %v3666_v45 = vld [vmem:[%s4056_s2] sm:$0xff]  ;;  %vm515_vm3 = vcmask 130048   ;;  %vm980_vm4 = vcmask 195584  }
   0x7   :  { %3132 = vmatprep.subr.bf16.mxu1 %v3131_v7  ;;  %v3599_v11 = vadd.f32 %v54_v10, %v52_v9  ;;  %s3483_s21 = smov 104   ;;  %s3484_s22 = smov 96   ;;  %v3661_v44 = vld [vmem:[%s4056_s2 + $0x8] sm:$0xff]  ;;  %vm1231_vm5 = vcmask 523264  }
   0x8   :  { %s3485_s2 = smov 64   ;;  %s3486_s20 = smov 8  }
   0x9   :  { %s3487_s23 = smov 16   ;;  %s3488_s24 = smov 24  }
   0xa   :  { %3134 = vmatpush3.bf16.msra.mxu1 %v3131_v7  ;;  %s3489_s30 = smov [#allocation2]  }
   0xb   :  { %s2672_s16 = sshll.u32 %s3489_s30, 4  ;;  %s2673_s16 = int_to_ptr.vmem [resolvable:$true] %s2672_s16 }
   0xc   :  { %p3462_p1 = scmp.lt.s32.totalorder %s2673_s16, %s2673_s16 }
   0xd   :  { %2920 = vmatmul.mubr.msk.f32.vlgmr.msra.gmra.mrb[0].mxu1 %vm70_vm0, %v3599_v11 }
  0xe0   :  { %v2921_v13 = vpop.f32.mrb[0].mxu1 }
  0xe1   :  { %v149_v14 = vadd.f32 %v2921_v13, %v2683_v12  ;;  %v143_v15 = vpop.f32.mrb[1].mxu1 }
  0xe2   :  { %v144_v16 = vadd.f32 %v2683_v12, %v143_v15 }
  0xe3   :  { %160 = vrot.lane.b32.xlu1 %v149_v14, %s3481_s0 }
  0xe4   :  { %154 = vrot.lane.b32.xlu0 %v144_v16, %s3482_s1  ;;  %2926 = vmatprep.mubr.msk.f32.mxu1 %vm170_vm1, %v144_v16  ;;  %v3613_v17 = vpack.i.bf16 %v149_v14, %v144_v16 }
  0xe7   :  { %158 = vrot.lane.b32.xlu1 %v144_v16, %s3481_s0 }
  0xe8   :  { %156 = vrot.lane.b32.xlu0 %v149_v14, %s3482_s1 }
  0xeb   :  { %164 = vrot.lane.b32.xlu1 %v149_v14, %s3483_s21 }
  0xec   :  { %162 = vrot.lane.b32.xlu0 %v144_v16, %s3483_s21 }
  0xf0   :  { %3298 = vrot.lane.b32.xlu0 %v3613_v17, %s3484_s22 }
 0x155   :  { %v161_v18 = vpop.permute.xlu1 %160 }
 0x156   :  { %v155_v19 = vpop.permute.xlu0 %154 }
 0x157   :  { %2933 = vmatprep.mubr.msk.f32.mxu0 %vm170_vm1, %v155_v19 }
 0x159   :  { %v159_v20 = vpop.permute.xlu1 %158 }
 0x15a   :  { %v3618_v21 = vpack.i.bf16 %v161_v18, %v159_v20  ;;  %v157_v22 = vpop.permute.xlu0 %156 }
 0x15b   :  { %v3620_v23 = vpack.i.bf16 %v157_v22, %v155_v19 }
 0x15c   :  { %3308 = vrot.lane.b32.xlu0 %v3618_v21, %s3484_s22 }
 0x15d   :  { %v165_v24 = vpop.permute.xlu1 %164  ;;  %3303 = vrot.lane.b32.xlu1 %v3620_v23, %s3484_s22 }
 0x15e   :  { %v163_v25 = vpop.permute.xlu0 %162 }
 0x15f   :  { %v3626_v26 = vpack.i.bf16 %v165_v24, %v163_v25 }
 0x161   :  { %3313 = vrot.lane.b32.xlu1 %v3626_v26, %s3484_s22 }
 0x162   :  { %v3299_v27 = vpop.permute.xlu0 %3298 }
 0x163   :  { %v3301_v28 = vunpack.i.h.bf16 %v3299_v27  ;;  %v3300_v29 = vunpack.i.l.bf16 %v3299_v27 }
 0x165   :  { %v3135_v31 = vpack.c.bf16 %v3301_v28, %v3300_v29 }
 0x167   :  { %3137 = vmatprep.subr.msk.bf16.mxu1 %vm3632_vm2, %v3135_v31 }
 0x168   :  { %3140 = vmatpush3.bf16.xpose.msk.msra.mxu1 %vm3632_vm2, %v3135_v31 }
 0x16f   :  { %2927 = vmatmul.mubr.msk.f32.vlgmr.msra.gmra.mrb[2].mxu1 %vm170_vm1, %v149_v14 }
 0x170   :  { %2940 = vmatprep.mubr.msk.f32.mxu1 %vm170_vm1, %v159_v20 }
 0x1ce   :  { %v3309_v32 = vpop.permute.xlu0 %3308 }
 0x1cf   :  { %v3311_v33 = vunpack.i.h.bf16 %v3309_v32  ;;  %v3310_v34 = vunpack.i.l.bf16 %v3309_v32  ;;  %v3304_v35 = vpop.permute.xlu1 %3303 }
 0x1d0   :  { %v3306_v36 = vunpack.i.h.bf16 %v3304_v35  ;;  %v3305_v37 = vunpack.i.l.bf16 %v3304_v35 }
 0x1d1   :  { %v3147_v38 = vpack.c.bf16 %v3311_v33, %v3310_v34 }
 0x1d2   :  { %v3141_v39 = vpack.c.bf16 %v3306_v36, %v3305_v37 }
 0x1d3   :  { %v3314_v40 = vpop.permute.xlu1 %3313  ;;  %3149 = vmatprep.subr.msk.bf16.mxu1 %vm3632_vm2, %v3147_v38 }
 0x1d4   :  { %v3316_v41 = vunpack.i.h.bf16 %v3314_v40  ;;  %v3315_v42 = vunpack.i.l.bf16 %v3314_v40  ;;  %3143 = vmatprep.subr.msk.bf16.mxu0 %vm3632_vm2, %v3141_v39  ;;  %3152 = vmatpush3.bf16.xpose.msk.msra.mxu1 %vm3632_vm2, %v3147_v38 }
 0x1d5   :  { %3146 = vmatpush3.bf16.xpose.msk.msra.mxu0 %vm3632_vm2, %v3141_v39 }
 0x1d6   :  { %v3153_v43 = vpack.c.bf16 %v3316_v41, %v3315_v42 }
 0x1d8   :  { %3155 = vmatprep.subr.msk.bf16.mxu0 %vm3632_vm2, %v3153_v43 }
 0x1db   :  { %2941 = vmatmul.mubr.msk.f32.vlgmr.msra.gmra.mrb[4].mxu1 %vm170_vm1, %v161_v18 }
 0x1dc   :  { %2934 = vmatmul.mubr.msk.f32.vlgmr.msra.gmra.mrb[0].mxu0 %vm170_vm1, %v157_v22 }
 0x1dd   :  { %3158 = vmatpush3.bf16.xpose.msk.msra.mxu0 %vm3632_vm2, %v3153_v43  ;;  %2947 = vmatprep.mubr.msk.f32.mxu0 %vm170_vm1, %v163_v25 }
 0x1e4   :  { %2948 = vmatmul.mubr.msk.f32.vlgmr.msra.gmra.mrb[2].mxu0 %vm170_vm1, %v165_v24 }
 0x242   :  { %v2928_v46 = vpop.f32.mrb[2].mxu1 }
 0x243   :  { %v251_v47 = vadd.f32 %v2928_v46, %v3661_v44  ;;  %v245_v48 = vpop.f32.mrb[3].mxu1 }
 0x244   :  { %v246_v49 = vadd.f32 %v245_v48, %v3666_v45 }
 0x245   :  { %v519_v50 = vsel %vm515_vm3, %v251_v47, -inf }
 0x246   :  { %520 = vmax.xlane.f32.xlu1 %v519_v50  ;;  %v516_v51 = vsel %vm515_vm3, %v246_v49, -inf }
 0x247   :  { %517 = vmax.xlane.f32.xlu0 %v516_v51 }
 0x2ae   :  { %v2942_v52 = vpop.f32.mrb[4].mxu1 }
 0x2af   :  { %v2935_v53 = vpop.f32.mrb[0].mxu0  ;;  %v419_v54 = vpop.f32.mrb[5].mxu1  ;;  %v425_v61 = vadd.f32 %v2942_v52, %v3661_v44 }
 0x2b0   :  { %v338_v55 = vadd.f32 %v2935_v53, %v3661_v44  ;;  %v420_v56 = vadd.f32 %v419_v54, %v3666_v45  ;;  %v332_v57 = vpop.f32.mrb[1].mxu0 }
 0x2b1   :  { %v333_v58 = vadd.f32 %v332_v57, %v3666_v45  ;;  %v531_v3 = vsel %vm515_vm3, %v425_v61, -inf }
 0x2b2   :  { %v528_v59 = vsel %vm515_vm3, %v420_v56, -inf  ;;  %v525_v60 = vsel %vm515_vm3, %v338_v55, -inf }
 0x2b3   :  { %529 = vmax.xlane.f32.xlu1 %v528_v59  ;;  %526 = vmax.xlane.f32.xlu0 %v525_v60  ;;  %v522_v62 = vsel %vm515_vm3, %v333_v58, -inf }
 0x2b7   :  { %v2949_v63 = vpop.f32.mrb[2].mxu0  ;;  %523 = vmax.xlane.f32.xlu0 %v522_v62 }
 0x2b8   :  { %v506_v0 = vpop.f32.mrb[3].mxu0  ;;  %v512_v2 = vadd.f32 %v2949_v63, %v3661_v44 }
 0x2b9   :  { %v3680_v1 = vadd.f32 %v506_v0, %v3666_v45 }
 0x2ba   :  { %v537_v5 = vsel %vm515_vm3, %v512_v2, -inf }
 0x2bb   :  { %532 = vmax.xlane.f32.xlu0 %v531_v3  ;;  %v534_v4 = vsel %vm515_vm3, %v3680_v1, -inf }
 0x2bc   :  { %535 = vmax.xlane.f32.xlu1 %v534_v4 }
 0x2bf   :  { %538 = vmax.xlane.f32.xlu0 %v537_v5 }
 0x2cd   :  { %3318 = vrot.lane.b32.xlu1 %v3613_v17, %s3485_s2 }
 0x2d3   :  { %v521_v6 = vpop.xlane.xlu1 %520 }
 0x2d4   :  { %v541_v7 = vsub.f32 %v251_v47, %v521_v6  ;;  %v518_v10 = vpop.xlane.xlu0 %517 }
 0x2d5   :  { %v540_v12 = vsub.f32 %v246_v49, %v518_v10 }
 0x2d6   :  { %v550_v9 = vmul.f32 1.442695, %v541_v7 }
 0x2d7   :  { %v548_v13 = vmul.f32 1.442695, %v540_v12 }
 0x2d8   :  { %3377 = vpow2.f32 %v550_v9 }
 0x2d9   :  { %3379 = vpow2.f32 %v548_v13 }
 0x2e2   :  { %v3378_v14 = vpop.eup %3377 }
 0x2e3   :  { %v567_v15 = vsel %vm515_vm3, %v3378_v14, 0.0  ;;  %v3380_v16 = vpop.eup %3379 }
 0x2e4   :  { %568 = vadd.xlane.f32.xlu0 %v567_v15  ;;  %v564_v18 = vsel %vm515_vm3, %v3380_v16, 0.0 }
 0x2f1   :  { %565 = vadd.xlane.f32.xlu1 %v564_v18 }
 0x340   :  { %v530_v19 = vpop.xlane.xlu1 %529  ;;  %v527_v20 = vpop.xlane.xlu0 %526 }
 0x341   :  { %v543_v22 = vsub.f32 %v338_v55, %v527_v20  ;;  %v544_v17 = vsub.f32 %v420_v56, %v530_v19 }
 0x343   :  { %v554_v24 = vmul.f32 1.442695, %v543_v22  ;;  %v556_v28 = vmul.f32 1.442695, %v544_v17 }
 0x344   :  { %v524_v25 = vpop.xlane.xlu0 %523 }
 0x345   :  { %v542_v27 = vsub.f32 %v333_v58, %v524_v25  ;;  %3381 = vpow2.f32 %v554_v24 }
 0x347   :  { %v552_v29 = vmul.f32 1.442695, %v542_v27 }
 0x348   :  { %v533_v31 = vpop.xlane.xlu0 %532 }
 0x349   :  { %3383 = vpow2.f32 %v552_v29  ;;  %v545_v32 = vsub.f32 %v425_v61, %v533_v31  ;;  %v536_v33 = vpop.xlane.xlu1 %535 }
 0x34a   :  { %3385 = vpow2.f32 %v556_v28  ;;  %v546_v54 = vsub.f32 %v3680_v1, %v536_v33 }
 0x34b   :  { %v558_v34 = vmul.f32 1.442695, %v545_v32 }
 0x34c   :  { %v539_v35 = vpop.xlane.xlu0 %538  ;;  %v560_v56 = vmul.f32 1.442695, %v546_v54 }
 0x34d   :  { %3387 = vpow2.f32 %v558_v34  ;;  %v547_v36 = vsub.f32 %v512_v2, %v539_v35  ;;  %v3319_v37 = vpop.permute.xlu1 %3318  ;;  %v983_v35 = vld [vmem:[%s4059_s5] sm:$0xff] }
 0x34e   :  { %v3321_v38 = vunpack.i.h.bf16 %v3319_v37  ;;  %v3320_v39 = vunpack.i.l.bf16 %v3319_v37  ;;  %v985_v37 = vld [vmem:[%s4059_s5 + $0x10] sm:$0xff] }
 0x34f   :  { %v562_v40 = vmul.f32 1.442695, %v547_v36  ;;  %v3691_v41 = vpop.eup %3381  ;;  %v984_v36 = vld [vmem:[%s4059_s5 + $0x8] sm:$0xff] }
 0x350   :  { %v3159_v42 = vpack.c.bf16 %v3321_v38, %v3320_v39  ;;  %v573_v43 = vsel %vm515_vm3, %v3691_v41, 0.0  ;;  %v3175_v38 = vpack.c.bf16 %v984_v36, %v983_v35  ;;  %v986_v39 = vld [vmem:[%s4059_s5 + $0x18] sm:$0xff] }
 0x351   :  { %3389 = vpow2.f32 %v562_v40  ;;  %574 = vadd.xlane.f32.xlu0 %v573_v43  ;;  %v3179_v40 = vpack.c.bf16 %v986_v39, %v985_v37  ;;  %v2713_v39 = vld [vmem:[%s4061_s7] ss:$0 sm:$0xff] }
 0x352   :  { %3160 = vmatprep.subr.bf16.mxu1 %v3159_v42 }
 0x353   :  { %v3384_v46 = vpop.eup %3383  ;;  %3162 = vmatpush3.bf16.msra.mxu1 %v3159_v42 }
 0x354   :  { %v570_v47 = vsel %vm515_vm3, %v3384_v46, 0.0  ;;  %v3386_v48 = vpop.eup %3385 }
 0x355   :  { %571 = vadd.xlane.f32.xlu1 %v570_v47  ;;  %v576_v50 = vsel %vm515_vm3, %v3386_v48, 0.0 }
 0x357   :  { %v3388_v49 = vpop.eup %3387 }
 0x358   :  { %v579_v51 = vsel %vm515_vm3, %v3388_v49, 0.0 }
 0x359   :  { %577 = vadd.xlane.f32.xlu1 %v576_v50  ;;  %580 = vadd.xlane.f32.xlu0 %v579_v51 }
 0x35b   :  { %v3698_v52 = vpop.eup %3389 }
 0x35c   :  { %v585_v53 = vsel %vm515_vm3, %v3698_v52, 0.0 }
 0x35d   :  { %586 = vadd.xlane.f32.xlu0 %v585_v53 }
 0x36a   :  { %3328 = vrot.lane.b32.xlu1 %v3618_v21, %s3485_s2 }
 0x371   :  { %v569_v55 = vpop.xlane.xlu0 %568 }
 0x372   :  { %3391 = vrcp.f32 %v569_v55 }
 0x373   :  { %3323 = vrot.lane.b32.xlu0 %v3620_v23, %s3485_s2 }
 0x37c   :  { %v3392_v58 = vpop.eup %3391 }
 0x37d   :  { %v597_v62 = vmul.f32 %v3392_v58, %v3378_v14 }
 0x37e   :  { %v566_v57 = vpop.xlane.xlu1 %565 }
 0x37f   :  { %3393 = vrcp.f32 %v566_v57 }
 0x380   :  { %3395 = vpow2.f32 %v560_v56 }
 0x389   :  { %v3394_v59 = vpop.eup %3393 }
 0x38a   :  { %v3396_v60 = vpop.eup %3395  ;;  %v596_v61 = vmul.f32 %v3394_v59, %v3380_v16 }
 0x38b   :  { %v582_v21 = vsel %vm515_vm3, %v3396_v60, 0.0 }
 0x38c   :  { %2954 = vmatprep.mubr.msk.f32.mxu1 %vm515_vm3, %v596_v61  ;;  %v2710_v61 = vld [vmem:[%s4060_s6] ss:$0 sm:$0xff] }
 0x38d   :  { %2955 = vmatmul.mubr.msk.f32.vlgmr.msra.gmra.mrb[6].mxu1 %vm515_vm3, %v597_v62 }
 0x38e   :  { %583 = vadd.xlane.f32.xlu1 %v582_v21 }
 0x39f   :  { %3333 = vrot.lane.b32.xlu1 %v3626_v26, %s3485_s2 }
 0x3de   :  { %v575_v23 = vpop.xlane.xlu0 %574 }
 0x3e2   :  { %v572_v63 = vpop.xlane.xlu1 %571 }
 0x3e3   :  { %3397 = vrcp.f32 %v572_v63 }
 0x3e4   :  { %3399 = vrcp.f32 %v575_v23 }
 0x3e6   :  { %v578_v0 = vpop.xlane.xlu1 %577  ;;  %v581_v1 = vpop.xlane.xlu0 %580 }
 0x3e7   :  { %3401 = vrcp.f32 %v578_v0 }
 0x3e8   :  { %3403 = vrcp.f32 %v581_v1 }
 0x3ea   :  { %v3329_v2 = vpop.permute.xlu1 %3328  ;;  %v587_v3 = vpop.xlane.xlu0 %586 }
 0x3eb   :  { %v3331_v4 = vunpack.i.h.bf16 %v3329_v2  ;;  %v3330_v5 = vunpack.i.l.bf16 %v3329_v2  ;;  %3405 = vrcp.f32 %v587_v3 }
 0x3ed   :  { %v3398_v6 = vpop.eup %3397  ;;  %v3167_v7 = vpack.c.bf16 %v3331_v4, %v3330_v5 }
 0x3ee   :  { %v3324_v9 = vpop.permute.xlu0 %3323  ;;  %v598_v10 = vmul.f32 %v3398_v6, %v3384_v46  ;;  %v3400_v26 = vpop.eup %3399 }
 0x3ef   :  { %v3326_v12 = vunpack.i.h.bf16 %v3324_v9  ;;  %v3325_v13 = vunpack.i.l.bf16 %v3324_v9  ;;  %3168 = vmatprep.subr.bf16.mxu0 %v3167_v7  ;;  %v599_v20 = vmul.f32 %v3400_v26, %v3691_v41 }
 0x3f0   :  { %2961 = vmatprep.mubr.msk.f32.mxu1 %vm515_vm3, %v598_v10  ;;  %3170 = vmatpush3.bf16.msra.mxu0 %v3167_v7 }
 0x3f1   :  { %v3402_v14 = vpop.eup %3401  ;;  %v3163_v15 = vpack.c.bf16 %v3326_v12, %v3325_v13  ;;  %3176 = vmatprep.subr.bf16.mxu0 %v3175_v38 }
 0x3f2   :  { %v3404_v16 = vpop.eup %3403  ;;  %v600_v18 = vmul.f32 %v3402_v14, %v3386_v48  ;;  %v1123_v14 = vld [vmem:[%s4063_s9 + $0x8] sm:$0xff] }
 0x3f3   :  { %v601_v19 = vmul.f32 %v3404_v16, %v3388_v49  ;;  %3164 = vmatprep.subr.bf16.mxu1 %v3163_v15  ;;  %v1124_v16 = vld [vmem:[%s4063_s9 + $0x10] sm:$0xff] }
 0x3f4   :  { %3166 = vmatpush3.bf16.msra.mxu1 %v3163_v15  ;;  %2968 = vmatprep.mubr.msk.f32.mxu0 %vm515_vm3, %v600_v18  ;;  %v1125_v18 = vld [vmem:[%s4063_s9 + $0x18] sm:$0xff] }
 0x3f5   :  { %2969 = vmatmul.mubr.msk.f32.vlgmr.msra.gmra.mrb[4].mxu0 %vm515_vm3, %v601_v19  ;;  %v3406_v28 = vpop.eup %3405  ;;  %v3187_v19 = vpack.c.bf16 %v1125_v18, %v1124_v16  ;;  %v2726_v16 = vld [vmem:[%s4057_s3 + $0x38] sm:$0xff] }
 0x3f6   :  { %v603_v32 = vmul.f32 %v3406_v28, %v3698_v52  ;;  %3178 = vmatpush3.bf16.msra.mxu0 %v3175_v38  ;;  %v1220_v28 = vld [vmem:[%s4065_s11 + $0x20] sm:$0xff] }
 0x3f7   :  { %2962 = vmatmul.mubr.msk.f32.vlgmr.msra.gmra.mrb[8].mxu1 %vm515_vm3, %v599_v20  ;;  %3180 = vmatprep.subr.bf16.mxu0 %v3179_v40  ;;  %v1216_v20 = vld [vmem:[%s4065_s11] sm:$0xff] }
 0x3fa   :  { %3182 = vmatpush3.bf16.msra.mxu0 %v3179_v40 }
 0x41b   :  { %v584_v22 = vpop.xlane.xlu1 %583 }
 0x41c   :  { %3407 = vrcp.f32 %v584_v22  ;;  %v1217_v22 = vld [vmem:[%s4065_s11 + $0x8] sm:$0xff] }
 0x41f   :  { %v3334_v17 = vpop.permute.xlu1 %3333 }
 0x420   :  { %v3336_v24 = vunpack.i.h.bf16 %v3334_v17  ;;  %v3335_v25 = vunpack.i.l.bf16 %v3334_v17  ;;  %v1218_v17 = vld [vmem:[%s4065_s11 + $0x10] sm:$0xff] }
 0x422   :  { %v3171_v27 = vpack.c.bf16 %v3336_v24, %v3335_v25  ;;  %v3191_v24 = vpack.c.bf16 %v1217_v22, %v1216_v20  ;;  %v1219_v25 = vld [vmem:[%s4065_s11 + $0x18] sm:$0xff] }
 0x424   :  { %3172 = vmatprep.subr.bf16.mxu1 %v3171_v27  ;;  %3192 = vmatprep.subr.bf16.mxu0 %v3191_v24 }
 0x425   :  { %3174 = vmatpush3.bf16.msra.mxu1 %v3171_v27  ;;  %v3195_v27 = vpack.c.bf16 %v1219_v25, %v1218_v17 }
 0x426   :  { %v3408_v29 = vpop.eup %3407 }
 0x427   :  { %v602_v31 = vmul.f32 %v3408_v29, %v3396_v60  ;;  %v1221_v29 = vld [vmem:[%s4065_s11 + $0x28] sm:$0xff] }
 0x429   :  { %2975 = vmatprep.mubr.msk.f32.mxu1 %vm515_vm3, %v602_v31  ;;  %v3199_v31 = vpack.c.bf16 %v1221_v29, %v1220_v28  ;;  %v2721_v28 = vld [vmem:[%s4067_s13] ss:$0 sm:$0xff] }
 0x42a   :  { %2976 = vmatmul.mubr.msk.f32.vlgmr.msra.gmra.mrb[10].mxu1 %vm515_vm3, %v603_v32 }
 0x460   :  { %v2956_v33 = vpop.f32.mrb[6].mxu1 }
 0x461   :  { %v682_v34 = vpop.f32.mrb[7].mxu1 }
 0x4c8   :  { %v2970_v41 = vpop.f32.mrb[4].mxu0 }
 0x4c9   :  { %v856_v42 = vpop.f32.mrb[5].mxu0 }
 0x4ca   :  { %v2963_v43 = vpop.f32.mrb[8].mxu1 }
 0x4cb   :  { %956 = vrot.lane.b32.xlu1 %v2963_v43, %s3486_s20  ;;  %v769_v46 = vpop.f32.mrb[9].mxu1 }
 0x4cc   :  { %954 = vrot.lane.b32.xlu0 %v769_v46, %s3486_s20 }
 0x4cf   :  { %964 = vrot.lane.b32.xlu1 %v2970_v41, %s3487_s23  ;;  %v2714_v41 = vld [vmem:[%s4062_s8] ss:$0 sm:$0xff] }
 0x4d0   :  { %962 = vrot.lane.b32.xlu0 %v856_v42, %s3487_s23 }
 0x4fd   :  { %v2977_v47 = vpop.f32.mrb[10].mxu1 }
 0x4fe   :  { %972 = vrot.lane.b32.xlu1 %v2977_v47, %s3488_s24  ;;  %v943_v48 = vpop.f32.mrb[11].mxu1 }
 0x4ff   :  { %970 = vrot.lane.b32.xlu0 %v943_v48, %s3488_s24 }
 0x53d   :  { %v957_v49 = vpop.permute.xlu1 %956 }
 0x53e   :  { %v955_v50 = vpop.permute.xlu0 %954  ;;  %v977_v55 = vsel %vm170_vm1, %v2956_v33, %v957_v49 }
 0x53f   :  { %v976_v53 = vsel %vm170_vm1, %v682_v34, %v955_v50  ;;  %v1222_v50 = vld [vmem:[%s4065_s11 + $0x30] sm:$0xff] }
 0x541   :  { %v965_v51 = vpop.permute.xlu1 %964 }
 0x542   :  { %v963_v52 = vpop.permute.xlu0 %962  ;;  %v979_v58 = vsel %vm515_vm3, %v977_v55, %v965_v51  ;;  %v1223_v51 = vld [vmem:[%s4065_s11 + $0x38] sm:$0xff] }
 0x543   :  { %v978_v56 = vsel %vm515_vm3, %v976_v53, %v963_v52  ;;  %v3203_v52 = vpack.c.bf16 %v1223_v51, %v1222_v50  ;;  %v2715_v53 = vld [vmem:[%s4064_s10] ss:$0 sm:$0xff] }
 0x570   :  { %v973_v54 = vpop.permute.xlu1 %972 }
 0x571   :  { %v971_v57 = vpop.permute.xlu0 %970  ;;  %v982_v60 = vsel %vm980_vm4, %v979_v58, %v973_v54 }
 0x572   :  { %v981_v59 = vsel %vm980_vm4, %v978_v56, %v971_v57 }
 0x573   :  { %2986 = vmatprep.mubr.msk.f32.mxu0 %vm70_vm0, %v981_v59 }
 0x574   :  { %2987 = vmatmul.mubr.msk.f32.vlgmr.msra.gmra.mrb[6].mxu0 %vm70_vm0, %v982_v60  ;;  %v2718_v60 = vld [vmem:[%s4066_s12] ss:$0 sm:$0xff] }
 0x575   :  { %3194 = vmatpush3.bf16.msra.mxu0 %v3191_v24 }
 0x576   :  { %3196 = vmatprep.subr.bf16.mxu0 %v3195_v27 }
 0x579   :  { %3198 = vmatpush3.bf16.msra.mxu0 %v3195_v27 }
 0x57a   :  { %3200 = vmatprep.subr.bf16.mxu0 %v3199_v31 }
 0x57d   :  { %3202 = vmatpush3.bf16.msra.mxu0 %v3199_v31 }
 0x57e   :  { %3204 = vmatprep.subr.bf16.mxu0 %v3203_v52 }
 0x581   :  { %3206 = vmatpush3.bf16.msra.mxu0 %v3203_v52 }
 0x647   :  { %v2988_v62 = vpop.f32.mrb[6].mxu0 }
 0x648   :  { %v1072_v21 = vadd.f32 %v2988_v62, %v2710_v61  ;;  %v1066_v23 = vpop.f32.mrb[7].mxu0 }
 0x649   :  { %v1067_v63 = vadd.f32 %v2710_v61, %v1066_v23 }
 0x64a   :  { %v1076_v0 = vadd.f32 %v1072_v21, %v3599_v11 }
 0x64b   :  { %v1075_v1 = vadd.f32 %v1067_v63, %v3589_v8  ;;  %v1122_v8 = vld [vmem:[%s4063_s9] sm:$0xff] }
 0x64c   :  { %v1082_v2 = vsel %vm70_vm0, %v1076_v0, 0.0  ;;  %v3183_v15 = vpack.c.bf16 %v1123_v14, %v1122_v8  ;;  %v2724_v8 = vld [vmem:[%s4057_s3 + $0x28] sm:$0xff] }
 0x64d   :  { %1083 = vadd.xlane.f32.xlu1 %v1082_v2  ;;  %v1079_v3 = vsel %vm70_vm0, %v1075_v1, 0.0 }
 0x64e   :  { %1080 = vadd.xlane.f32.xlu0 %v1079_v3  ;;  %3184 = vmatprep.subr.bf16.mxu1 %v3183_v15 }
 0x64f   :  { %3186 = vmatpush3.bf16.msra.mxu1 %v3183_v15  ;;  %v2725_v15 = vld [vmem:[%s4057_s3 + $0x30] sm:$0xff] }
 0x650   :  { %3188 = vmatprep.subr.bf16.mxu1 %v3187_v19  ;;  %v3211_v18 = vpack.c.bf16 %v2726_v16, %v2725_v15 }
 0x653   :  { %3190 = vmatpush3.bf16.msra.mxu1 %v3187_v19 }
 0x6da   :  { %v1084_v4 = vpop.xlane.xlu1 %1083 }
 0x6db   :  { %v1087_v5 = vmul.f32 0.03125, %v1084_v4  ;;  %v1081_v6 = vpop.xlane.xlu0 %1080 }
 0x6dc   :  { %v1086_v7 = vmul.f32 0.03125, %v1081_v6 }
 0x6dd   :  { %v1089_v9 = vsub.f32 %v1076_v0, %v1087_v5 }
 0x6de   :  { %v1088_v10 = vsub.f32 %v1075_v1, %v1086_v7 }
 0x6df   :  { %v1091_v26 = vmul.f32 %v1089_v9, %v1089_v9 }
 0x6e0   :  { %v1090_v12 = vmul.f32 %v1088_v10, %v1088_v10 }
 0x6e1   :  { %v1095_v11 = vsel %vm70_vm0, %v1091_v26, 0.0 }
 0x6e2   :  { %v1092_v13 = vsel %vm70_vm0, %v1090_v12, 0.0 }
 0x6e3   :  { %1093 = vadd.xlane.f32.xlu0 %v1092_v13 }
 0x6e7   :  { %1096 = vadd.xlane.f32.xlu0 %v1095_v11  ;;  %v2723_v11 = vld [vmem:[%s4057_s3 + $0x20] sm:$0xff] }
 0x6e8   :  { %v3207_v14 = vpack.c.bf16 %v2724_v8, %v2723_v11 }
 0x6ea   :  { %3208 = vmatprep.subr.bf16.mxu1 %v3207_v14 }
 0x770   :  { %v1094_v32 = vpop.xlane.xlu0 %1093 }
 0x771   :  { %v1098_v33 = vmul.f32 0.03125, %v1094_v32 }
 0x773   :  { %v1100_v34 = vadd.f32 1e-05, %v1098_v33  ;;  %v2722_v33 = vld [vmem:[%s4068_s14] ss:$0 sm:$0xff] }
 0x774   :  { %v1097_v35 = vpop.xlane.xlu0 %1096 }
 0x775   :  { %3409 = vrsqrt.f32 %v1100_v34  ;;  %v1099_v36 = vmul.f32 0.03125, %v1097_v35 }
 0x777   :  { %v1101_v37 = vadd.f32 1e-05, %v1099_v36 }
 0x779   :  { %3411 = vrsqrt.f32 %v1101_v37 }
 0x77f   :  { %v3410_v38 = vpop.eup %3409 }
 0x780   :  { %v1104_v40 = vmul.f32 %v3410_v38, %v1088_v10  ;;  %v2728_v38 = vld [vmem:[%s4058_s4 + $0x1] ss:$0 sm:$0xff]  ;;  %s3457_s4 = scalar_lea.vmem %s2673_s16, 256 }
 0x781   :  { %p3458_p0 = scmp.ne.s32.totalorder %s2673_s16, %s3457_s4  ;;  %p3463_p2 = scmp.lt.s32.totalorder %s3457_s4, %s3457_s4 }
 0x782   :  { %v1112_v42 = vmul.f32 %v2713_v39, %v1104_v40 }
 0x783   :  { %v3412_v43 = vpop.eup %3411  ;;  %p3464_p3 = por %p3463_p2, %p3462_p1 }
 0x784   :  { %v1105_v46 = vmul.f32 %v3412_v43, %v1089_v9  ;;  %v1120_v47 = vadd.f32 %v2714_v41, %v1112_v42 }
 0x785   :  { %p3465_p4 = pnand %p3464_p3, %p3458_p0 }
 0x786   :  { %v1113_v48 = vmul.f32 %v2713_v39, %v1105_v46  ;;  %2997 = vmatprep.mubr.msk.f32.mxu1 %vm70_vm0, %v1120_v47 }
 0x788   :  { %v1121_v49 = vadd.f32 %v2714_v41, %v1113_v48 }
 0x78a   :  { %2998 = vmatmul.mubr.msk.f32.vlgmr.msra.gmra.mrb[12].mxu1 %vm70_vm0, %v1121_v49 }
 0x78b   :  { %3210 = vmatpush3.bf16.msra.mxu1 %v3207_v14 }
 0x78c   :  { %3212 = vmatprep.subr.bf16.mxu1 %v3211_v18 }
 0x78f   :  { %3214 = vmatpush3.bf16.msra.mxu1 %v3211_v18 }
 0x85d   :  { %v2999_v54 = vpop.f32.mrb[12].mxu1 }
 0x85e   :  { %v1211_v55 = vadd.f32 %v2999_v54, %v2715_v53  ;;  %v1205_v56 = vpop.f32.mrb[13].mxu1 }
 0x85f   :  { %v1206_v57 = vadd.f32 %v2715_v53, %v1205_v56 }
 0x860   :  { %v1215_v59 = vmax.f32 %v1211_v55, 0.0 }
 0x861   :  { %v1214_v58 = vmax.f32 %v1206_v57, 0.0 }
 0x863   :  { %3016 = vmatprep.mubr.msk.f32.mxu0 %vm1231_vm5, %v1214_v58 }
 0x864   :  { %3017 = vmatmul.mubr.msk.f32.vlgmr.msra.gmra.mrb[8].mxu0 %vm1231_vm5, %v1215_v59 }
 0x937   :  { %v3018_v61 = vpop.f32.mrb[8].mxu0 }
 0x938   :  { %v1310_v62 = vadd.f32 %v3018_v61, %v2718_v60  ;;  %v1304_v21 = vpop.f32.mrb[9].mxu0 }
 0x939   :  { %v1305_v23 = vadd.f32 %v2718_v60, %v1304_v21 }
 0x93a   :  { %v1314_v63 = vadd.f32 %v1310_v62, %v1121_v49 }
 0x93b   :  { %v1313_v0 = vadd.f32 %v1305_v23, %v1120_v47 }
 0x93c   :  { %v1320_v1 = vsel %vm70_vm0, %v1314_v63, 0.0 }
 0x93d   :  { %1321 = vadd.xlane.f32.xlu0 %v1320_v1  ;;  %v1317_v2 = vsel %vm70_vm0, %v1313_v0, 0.0 }
 0x93e   :  { %1318 = vadd.xlane.f32.xlu1 %v1317_v2 }
 0x9ca   :  { %v1322_v3 = vpop.xlane.xlu0 %1321 }
 0x9cb   :  { %v1324_v4 = vmul.f32 0.03125, %v1322_v3  ;;  %v1319_v5 = vpop.xlane.xlu1 %1318 }
 0x9cc   :  { %v1323_v6 = vmul.f32 0.03125, %v1319_v5 }
 0x9cd   :  { %v1326_v7 = vsub.f32 %v1314_v63, %v1324_v4 }
 0x9ce   :  { %v1325_v9 = vsub.f32 %v1313_v0, %v1323_v6 }
 0x9cf   :  { %v1328_v10 = vmul.f32 %v1326_v7, %v1326_v7 }
 0x9d0   :  { %v1327_v12 = vmul.f32 %v1325_v9, %v1325_v9 }
 0x9d1   :  { %v1332_v13 = vsel %vm70_vm0, %v1328_v10, 0.0 }
 0x9d2   :  { %1333 = vadd.xlane.f32.xlu0 %v1332_v13  ;;  %v1329_v26 = vsel %vm70_vm0, %v1327_v12, 0.0 }
 0x9d3   :  { %1330 = vadd.xlane.f32.xlu1 %v1329_v26 }
 0xa5f   :  { %v1334_v19 = vpop.xlane.xlu0 %1333 }
 0xa60   :  { %v1336_v20 = vmul.f32 0.03125, %v1334_v19  ;;  %v1331_v22 = vpop.xlane.xlu1 %1330 }
 0xa61   :  { %v1335_v17 = vmul.f32 0.03125, %v1331_v22 }
 0xa62   :  { %v1338_v24 = vadd.f32 1e-05, %v1336_v20 }
 0xa63   :  { %v1337_v25 = vadd.f32 1e-05, %v1335_v17 }
 0xa64   :  { %3413 = vrsqrt.f32 %v1338_v24 }
 0xa65   :  { %3415 = vrsqrt.f32 %v1337_v25 }
 0xa6e   :  { %v3414_v27 = vpop.eup %3413 }
 0xa6f   :  { %v3416_v29 = vpop.eup %3415  ;;  %v1342_v31 = vmul.f32 %v3414_v27, %v1326_v7 }
 0xa70   :  { %v1341_v32 = vmul.f32 %v3416_v29, %v1325_v9 }
 0xa71   :  { %v1350_v34 = vmul.f32 %v2721_v28, %v1342_v31 }
 0xa72   :  { %v1349_v35 = vmul.f32 %v2721_v28, %v1341_v32 }
 0xa73   :  { %v3831_v37 = vadd.f32 %v2722_v33, %v1350_v34 }
 0xa74   :  { %v3829_v36 = vadd.f32 %v2722_v33, %v1349_v35 }
 0xa76   :  { %3027 = vmatprep.mubr.msk.f32.mxu1 %vm70_vm0, %v3829_v36 }
 0xa77   :  { %3028 = vmatmul.mubr.msk.f32.vlgmr.msra.gmra.mrb[14].mxu1 %vm70_vm0, %v3831_v37 }
 0xb4a   :  { %v3029_v39 = vpop.f32.mrb[14].mxu1 }
 0xb4b   :  { %v1450_v40 = vadd.f32 %v3029_v39, %v2728_v38  ;;  %v1444_v41 = vpop.f32.mrb[15].mxu1 }
 0xb4c   :  { %v1445_v42 = vadd.f32 %v2728_v38, %v1444_v41 }
 0xb4d   :  { %1461 = vrot.lane.b32.xlu1 %v1450_v40, %s3481_s0  ;;  %1457 = vrot.lane.b32.xlu0 %v1450_v40, %s3482_s1 }
 0xb4e   :  { %3034 = vmatprep.mubr.msk.f32.mxu1 %vm170_vm1, %v1445_v42  ;;  %v3845_v43 = vpack.i.bf16 %v1450_v40, %v1445_v42 }
 0xb51   :  { %1463 = vrot.lane.b32.xlu0 %v1445_v42, %s3483_s21  ;;  %1455 = vrot.lane.b32.xlu1 %v1445_v42, %s3482_s1 }
 0xb55   :  { %3338 = vrot.lane.b32.xlu0 %v3845_v43, %s3484_s22  ;;  %1459 = vrot.lane.b32.xlu1 %v1445_v42, %s3481_s0 }
 0xb59   :  { %1465 = vrot.lane.b32.xlu1 %v1450_v40, %s3483_s21 }
 0xbbf   :  { %v1462_v46 = vpop.permute.xlu1 %1461  ;;  %v1458_v47 = vpop.permute.xlu0 %1457 }
 0xbc3   :  { %v1464_v48 = vpop.permute.xlu0 %1463  ;;  %v1456_v49 = vpop.permute.xlu1 %1455 }
 0xbc4   :  { %v3851_v50 = vpack.i.bf16 %v1458_v47, %v1456_v49  ;;  %3041 = vmatprep.mubr.msk.f32.mxu0 %vm170_vm1, %v1456_v49 }
 0xbc6   :  { %3343 = vrot.lane.b32.xlu1 %v3851_v50, %s3484_s22 }
 0xbc7   :  { %v3339_v51 = vpop.permute.xlu0 %3338  ;;  %v1460_v52 = vpop.permute.xlu1 %1459 }
 0xbc8   :  { %v3341_v53 = vunpack.i.h.bf16 %v3339_v51  ;;  %v3340_v54 = vunpack.i.l.bf16 %v3339_v51  ;;  %v3856_v55 = vpack.i.bf16 %v1462_v46, %v1460_v52 }
 0xbca   :  { %v3215_v56 = vpack.c.bf16 %v3341_v53, %v3340_v54  ;;  %3348 = vrot.lane.b32.xlu0 %v3856_v55, %s3484_s22 }
 0xbcb   :  { %v1466_v57 = vpop.permute.xlu1 %1465 }
 0xbcc   :  { %v3860_v58 = vpack.i.bf16 %v1466_v57, %v1464_v48  ;;  %3217 = vmatprep.subr.msk.bf16.mxu1 %vm3632_vm2, %v3215_v56 }
 0xbcd   :  { %3220 = vmatpush3.bf16.xpose.msk.msra.mxu1 %vm3632_vm2, %v3215_v56 }
 0xbce   :  { %3353 = vrot.lane.b32.xlu1 %v3860_v58, %s3484_s22 }
 0xbd4   :  { %3035 = vmatmul.mubr.msk.f32.vlgmr.msra.gmra.mrb[16].mxu1 %vm170_vm1, %v1450_v40 }
 0xbd5   :  { %3048 = vmatprep.mubr.msk.f32.mxu1 %vm170_vm1, %v1460_v52 }
 0xc38   :  { %v3344_v59 = vpop.permute.xlu1 %3343 }
 0xc39   :  { %v3346_v60 = vunpack.i.h.bf16 %v3344_v59  ;;  %v3345_v61 = vunpack.i.l.bf16 %v3344_v59 }
 0xc3b   :  { %v3221_v62 = vpack.c.bf16 %v3346_v60, %v3345_v61 }
 0xc3c   :  { %v3349_v21 = vpop.permute.xlu0 %3348 }
 0xc3d   :  { %v3351_v23 = vunpack.i.h.bf16 %v3349_v21  ;;  %v3350_v63 = vunpack.i.l.bf16 %v3349_v21  ;;  %3223 = vmatprep.subr.msk.bf16.mxu0 %vm3632_vm2, %v3221_v62 }
 0xc3e   :  { %3226 = vmatpush3.bf16.xpose.msk.msra.mxu0 %vm3632_vm2, %v3221_v62 }
 0xc3f   :  { %v3227_v0 = vpack.c.bf16 %v3351_v23, %v3350_v63 }
 0xc40   :  { %v3354_v1 = vpop.permute.xlu1 %3353 }
 0xc41   :  { %v3356_v2 = vunpack.i.h.bf16 %v3354_v1  ;;  %v3355_v3 = vunpack.i.l.bf16 %v3354_v1  ;;  %3229 = vmatprep.subr.msk.bf16.mxu1 %vm3632_vm2, %v3227_v0 }
 0xc42   :  { %3232 = vmatpush3.bf16.xpose.msk.msra.mxu1 %vm3632_vm2, %v3227_v0 }
 0xc43   :  { %v3233_v4 = vpack.c.bf16 %v3356_v2, %v3355_v3 }
 0xc45   :  { %3042 = vmatmul.mubr.msk.f32.vlgmr.msra.gmra.mrb[10].mxu0 %vm170_vm1, %v1458_v47  ;;  %3235 = vmatprep.subr.msk.bf16.mxu0 %vm3632_vm2, %v3233_v4 }
 0xc46   :  { %3238 = vmatpush3.bf16.xpose.msk.msra.mxu0 %vm3632_vm2, %v3233_v4  ;;  %3055 = vmatprep.mubr.msk.f32.mxu0 %vm170_vm1, %v1464_v48 }
 0xc49   :  { %3049 = vmatmul.mubr.msk.f32.vlgmr.msra.gmra.mrb[18].mxu1 %vm170_vm1, %v1462_v46 }
 0xc4d   :  { %3056 = vmatmul.mubr.msk.f32.vlgmr.msra.gmra.mrb[12].mxu0 %vm170_vm1, %v1466_v57 }
 0xca7   :  { %v3036_v5 = vpop.f32.mrb[16].mxu1 }
 0xca8   :  { %v1551_v6 = vadd.f32 %v3036_v5, %v3661_v44  ;;  %v1545_v7 = vpop.f32.mrb[17].mxu1 }
 0xca9   :  { %v1546_v9 = vadd.f32 %v1545_v7, %v3666_v45 }
 0xcaa   :  { %v1818_v10 = vsel %vm515_vm3, %v1551_v6, -inf }
 0xcab   :  { %1819 = vmax.xlane.f32.xlu1 %v1818_v10  ;;  %v1815_v12 = vsel %vm515_vm3, %v1546_v9, -inf }
 0xcac   :  { %1816 = vmax.xlane.f32.xlu0 %v1815_v12 }
 0xd18   :  { %v3043_v30 = vpop.f32.mrb[10].mxu0 }
 0xd19   :  { %v1638_v13 = vadd.f32 %v3043_v30, %v3661_v44  ;;  %v1632_v26 = vpop.f32.mrb[11].mxu0 }
 0xd1a   :  { %v1633_v11 = vadd.f32 %v1632_v26, %v3666_v45 }
 0xd1b   :  { %v1824_v8 = vsel %vm515_vm3, %v1638_v13, -inf }
 0xd1c   :  { %v3050_v14 = vpop.f32.mrb[18].mxu1  ;;  %1825 = vmax.xlane.f32.xlu0 %v1824_v8  ;;  %v1821_v19 = vsel %vm515_vm3, %v1633_v11, -inf }
 0xd1d   :  { %v1719_v15 = vpop.f32.mrb[19].mxu1  ;;  %v1725_v18 = vadd.f32 %v3050_v14, %v3661_v44 }
 0xd1e   :  { %v1720_v16 = vadd.f32 %v1719_v15, %v3666_v45 }
 0xd1f   :  { %v1830_v27 = vsel %vm515_vm3, %v1725_v18, -inf }
 0xd20   :  { %v3057_v20 = vpop.f32.mrb[12].mxu0  ;;  %1822 = vmax.xlane.f32.xlu0 %v1821_v19  ;;  %v1827_v22 = vsel %vm515_vm3, %v1720_v16, -inf }
 0xd21   :  { %v1806_v17 = vpop.f32.mrb[13].mxu0  ;;  %1828 = vmax.xlane.f32.xlu1 %v1827_v22  ;;  %v1812_v25 = vadd.f32 %v3057_v20, %v3661_v44 }
 0xd22   :  { %v3898_v24 = vadd.f32 %v1806_v17, %v3666_v45 }
 0xd23   :  { %v1836_v29 = vsel %vm515_vm3, %v1812_v25, -inf }
 0xd24   :  { %1831 = vmax.xlane.f32.xlu0 %v1830_v27  ;;  %v1833_v28 = vsel %vm515_vm3, %v3898_v24, -inf }
 0xd25   :  { %1834 = vmax.xlane.f32.xlu1 %v1833_v28 }
 0xd28   :  { %1837 = vmax.xlane.f32.xlu0 %v1836_v29 }
 0xd36   :  { %3358 = vrot.lane.b32.xlu1 %v3845_v43, %s3485_s2 }
 0xd38   :  { %v1820_v31 = vpop.xlane.xlu1 %1819 }
 0xd39   :  { %v1840_v32 = vsub.f32 %v1551_v6, %v1820_v31  ;;  %v1817_v45 = vpop.xlane.xlu0 %1816 }
 0xd3a   :  { %v1839_v34 = vsub.f32 %v1546_v9, %v1817_v45 }
 0xd3b   :  { %v1849_v33 = vmul.f32 1.442695, %v1840_v32 }
 0xd3c   :  { %v1847_v35 = vmul.f32 1.442695, %v1839_v34 }
 0xd3d   :  { %3417 = vpow2.f32 %v1849_v33 }
 0xd3e   :  { %3419 = vpow2.f32 %v1847_v35 }
 0xd47   :  { %v3907_v44 = vpop.eup %3417 }
 0xd48   :  { %v1866_v38 = vsel %vm515_vm3, %v3907_v44, 0.0  ;;  %v3420_v39 = vpop.eup %3419 }
 0xd49   :  { %1867 = vadd.xlane.f32.xlu0 %v1866_v38  ;;  %v1863_v40 = vsel %vm515_vm3, %v3420_v39, 0.0 }
 0xd5a   :  { %1864 = vadd.xlane.f32.xlu1 %v1863_v40 }
 0xda9   :  { %v1826_v41 = vpop.xlane.xlu0 %1825 }
 0xdaa   :  { %v1842_v42 = vsub.f32 %v1638_v13, %v1826_v41 }
 0xdac   :  { %v1853_v43 = vmul.f32 1.442695, %v1842_v42 }
 0xdad   :  { %v1823_v46 = vpop.xlane.xlu0 %1822 }
 0xdae   :  { %3421 = vpow2.f32 %v1853_v43  ;;  %v1841_v47 = vsub.f32 %v1633_v11, %v1823_v46  ;;  %v1829_v48 = vpop.xlane.xlu1 %1828 }
 0xdaf   :  { %v1843_v49 = vsub.f32 %v1720_v16, %v1829_v48 }
 0xdb0   :  { %v1851_v51 = vmul.f32 1.442695, %v1841_v47 }
 0xdb1   :  { %v1855_v52 = vmul.f32 1.442695, %v1843_v49  ;;  %v1832_v53 = vpop.xlane.xlu0 %1831 }
 0xdb2   :  { %3423 = vpow2.f32 %v1851_v51  ;;  %v1844_v54 = vsub.f32 %v1725_v18, %v1832_v53  ;;  %v1835_v56 = vpop.xlane.xlu1 %1834 }
 0xdb3   :  { %3425 = vpow2.f32 %v1855_v52  ;;  %v1845_v12 = vsub.f32 %v3898_v24, %v1835_v56  ;;  %v2756_v56 = vld [vmem:[%s4059_s5 + $0x28] sm:$0xff] }
 0xdb4   :  { %v1857_v57 = vmul.f32 1.442695, %v1844_v54  ;;  %v2755_v54 = vld [vmem:[%s4059_s5 + $0x20] sm:$0xff] }
 0xdb5   :  { %v1838_v59 = vpop.xlane.xlu0 %1837  ;;  %v1859_v13 = vmul.f32 1.442695, %v1845_v12 }
 0xdb6   :  { %3427 = vpow2.f32 %v1857_v57  ;;  %v1846_v60 = vsub.f32 %v1812_v25, %v1838_v59  ;;  %v3359_v61 = vpop.permute.xlu1 %3358  ;;  %v2757_v57 = vld [vmem:[%s4059_s5 + $0x30] sm:$0xff]  ;;  %v3255_v59 = vpack.c.bf16 %v2756_v56, %v2755_v54  ;;  %v2765_v56 = vld [vmem:[%s4061_s7 + $0x1] ss:$0 sm:$0xff] }
 0xdb7   :  { %v3361_v62 = vunpack.i.h.bf16 %v3359_v61  ;;  %v3360_v21 = vunpack.i.l.bf16 %v3359_v61 }
 0xdb8   :  { %v3912_v23 = vpop.eup %3421  ;;  %v1861_v63 = vmul.f32 1.442695, %v1846_v60  ;;  %v2758_v60 = vld [vmem:[%s4059_s5 + $0x38] sm:$0xff] }
 0xdb9   :  { %v3239_v0 = vpack.c.bf16 %v3361_v62, %v3360_v21  ;;  %v1872_v1 = vsel %vm515_vm3, %v3912_v23, 0.0  ;;  %v3259_v61 = vpack.c.bf16 %v2758_v60, %v2757_v57 }
 0xdba   :  { %3429 = vpow2.f32 %v1861_v63  ;;  %1873 = vadd.xlane.f32.xlu0 %v1872_v1 }
 0xdbb   :  { %3240 = vmatprep.subr.bf16.mxu1 %v3239_v0 }
 0xdbc   :  { %v3424_v2 = vpop.eup %3423  ;;  %3242 = vmatpush3.bf16.msra.mxu1 %v3239_v0 }
 0xdbd   :  { %v1869_v3 = vsel %vm515_vm3, %v3424_v2, 0.0  ;;  %v3426_v4 = vpop.eup %3425 }
 0xdbe   :  { %1870 = vadd.xlane.f32.xlu1 %v1869_v3  ;;  %v1875_v6 = vsel %vm515_vm3, %v3426_v4, 0.0 }
 0xdc0   :  { %v3428_v5 = vpop.eup %3427 }
 0xdc1   :  { %v1878_v7 = vsel %vm515_vm3, %v3428_v5, 0.0 }
 0xdc2   :  { %1876 = vadd.xlane.f32.xlu1 %v1875_v6  ;;  %1879 = vadd.xlane.f32.xlu0 %v1878_v7 }
 0xdc4   :  { %v3919_v9 = vpop.eup %3429 }
 0xdc5   :  { %v1884_v10 = vsel %vm515_vm3, %v3919_v9, 0.0 }
 0xdc6   :  { %1885 = vadd.xlane.f32.xlu0 %v1884_v10 }
 0xdd3   :  { %3368 = vrot.lane.b32.xlu1 %v3856_v55, %s3485_s2 }
 0xdd6   :  { %v1868_v30 = vpop.xlane.xlu0 %1867 }
 0xdd7   :  { %3431 = vrcp.f32 %v1868_v30 }
 0xddc   :  { %3363 = vrot.lane.b32.xlu0 %v3851_v50, %s3485_s2 }
 0xde1   :  { %v3432_v11 = vpop.eup %3431 }
 0xde2   :  { %v1896_v16 = vmul.f32 %v3432_v11, %v3907_v44  ;;  %v2760_v11 = vld [vmem:[%s4060_s6 + $0x1] ss:$0 sm:$0xff] }
 0xde7   :  { %v1865_v26 = vpop.xlane.xlu1 %1864 }
 0xde8   :  { %3433 = vrcp.f32 %v1865_v26 }
 0xde9   :  { %3435 = vpow2.f32 %v1859_v13 }
 0xdf2   :  { %v3434_v8 = vpop.eup %3433 }
 0xdf3   :  { %v3436_v14 = vpop.eup %3435  ;;  %v1895_v15 = vmul.f32 %v3434_v8, %v3420_v39 }
 0xdf4   :  { %v1881_v50 = vsel %vm515_vm3, %v3436_v14, 0.0 }
 0xdf5   :  { %3062 = vmatprep.mubr.msk.f32.mxu1 %vm515_vm3, %v1895_v15 }
 0xdf6   :  { %3063 = vmatmul.mubr.msk.f32.vlgmr.msra.gmra.mrb[20].mxu1 %vm515_vm3, %v1896_v16 }
 0xdf7   :  { %1882 = vadd.xlane.f32.xlu1 %v1881_v50 }
 0xe08   :  { %3373 = vrot.lane.b32.xlu1 %v3860_v58, %s3485_s2 }
 0xe47   :  { %v1874_v55 = vpop.xlane.xlu0 %1873 }
 0xe4b   :  { %v1871_v18 = vpop.xlane.xlu1 %1870 }
 0xe4c   :  { %3437 = vrcp.f32 %v1871_v18 }
 0xe4d   :  { %3439 = vrcp.f32 %v1874_v55 }
 0xe4f   :  { %v1877_v19 = vpop.xlane.xlu1 %1876  ;;  %v1880_v20 = vpop.xlane.xlu0 %1879 }
 0xe50   :  { %3441 = vrcp.f32 %v1877_v19 }
 0xe51   :  { %3443 = vrcp.f32 %v1880_v20 }
 0xe53   :  { %v3369_v22 = vpop.permute.xlu1 %3368  ;;  %v1886_v17 = vpop.xlane.xlu0 %1885 }
 0xe54   :  { %v3371_v24 = vunpack.i.h.bf16 %v3369_v22  ;;  %v3370_v25 = vunpack.i.l.bf16 %v3369_v22  ;;  %3445 = vrcp.f32 %v1886_v17 }
 0xe56   :  { %v3438_v27 = vpop.eup %3437  ;;  %v3247_v28 = vpack.c.bf16 %v3371_v24, %v3370_v25 }
 0xe57   :  { %v3364_v29 = vpop.permute.xlu0 %3363  ;;  %v1897_v31 = vmul.f32 %v3438_v27, %v3424_v2  ;;  %v3440_v58 = vpop.eup %3439 }
 0xe58   :  { %v3366_v32 = vunpack.i.h.bf16 %v3364_v29  ;;  %v3365_v33 = vunpack.i.l.bf16 %v3364_v29  ;;  %3248 = vmatprep.subr.bf16.mxu0 %v3247_v28  ;;  %v1898_v39 = vmul.f32 %v3440_v58, %v3912_v23  ;;  %v2769_v58 = vld [vmem:[%s4063_s9 + $0x30] sm:$0xff] }
 0xe59   :  { %3069 = vmatprep.mubr.msk.f32.mxu1 %vm515_vm3, %v1897_v31  ;;  %3250 = vmatpush3.bf16.msra.mxu0 %v3247_v28 }
 0xe5a   :  { %v3442_v45 = vpop.eup %3441  ;;  %v3243_v34 = vpack.c.bf16 %v3366_v32, %v3365_v33  ;;  %3256 = vmatprep.subr.bf16.mxu0 %v3255_v59  ;;  %v2768_v32 = vld [vmem:[%s4063_s9 + $0x28] sm:$0xff] }
 0xe5b   :  { %v3444_v44 = vpop.eup %3443  ;;  %v1899_v35 = vmul.f32 %v3442_v45, %v3426_v4  ;;  %v2770_v45 = vld [vmem:[%s4063_s9 + $0x38] sm:$0xff] }
 0xe5c   :  { %v1900_v38 = vmul.f32 %v3444_v44, %v3428_v5  ;;  %3244 = vmatprep.subr.bf16.mxu1 %v3243_v34  ;;  %v2775_v44 = vld [vmem:[%s4065_s11 + $0x40] sm:$0xff] }
 0xe5d   :  { %3246 = vmatpush3.bf16.msra.mxu1 %v3243_v34  ;;  %3076 = vmatprep.mubr.msk.f32.mxu0 %vm515_vm3, %v1899_v35  ;;  %v3267_v34 = vpack.c.bf16 %v2770_v45, %v2769_v58  ;;  %v2776_v35 = vld [vmem:[%s4065_s11 + $0x48] sm:$0xff]  ;;  %v2789_v58 = vld [vmem:[%s4067_s13 + $0x1] ss:$0 sm:$0xff] }
 0xe5e   :  { %3077 = vmatmul.mubr.msk.f32.vlgmr.msra.gmra.mrb[14].mxu0 %vm515_vm3, %v1900_v38  ;;  %v3446_v47 = vpop.eup %3445  ;;  %v2777_v38 = vld [vmem:[%s4065_s11 + $0x50] sm:$0xff] }
 0xe5f   :  { %v1902_v51 = vmul.f32 %v3446_v47, %v3919_v9  ;;  %3258 = vmatpush3.bf16.msra.mxu0 %v3255_v59  ;;  %v2766_v59 = vld [vmem:[%s4062_s8 + $0x1] ss:$0 sm:$0xff] }
 0xe60   :  { %3070 = vmatmul.mubr.msk.f32.vlgmr.msra.gmra.mrb[22].mxu1 %vm515_vm3, %v1898_v39  ;;  %3260 = vmatprep.subr.bf16.mxu0 %v3259_v61  ;;  %v3271_v39 = vpack.c.bf16 %v2776_v35, %v2775_v44  ;;  %v2790_v35 = vld [vmem:[%s4068_s14 + $0x1] ss:$0 sm:$0xff] }
 0xe63   :  { %3262 = vmatpush3.bf16.msra.mxu0 %v3259_v61 }
 0xe64   :  { %3272 = vmatprep.subr.bf16.mxu0 %v3271_v39 }
 0xe84   :  { %v1883_v40 = vpop.xlane.xlu1 %1882 }
 0xe85   :  { %3447 = vrcp.f32 %v1883_v40  ;;  %v2778_v40 = vld [vmem:[%s4065_s11 + $0x58] sm:$0xff] }
 0xe88   :  { %v3374_v41 = vpop.permute.xlu1 %3373 }
 0xe89   :  { %v3376_v42 = vunpack.i.h.bf16 %v3374_v41  ;;  %v3375_v43 = vunpack.i.l.bf16 %v3374_v41  ;;  %v3275_v41 = vpack.c.bf16 %v2778_v40, %v2777_v38 }
 0xe8b   :  { %v3251_v46 = vpack.c.bf16 %v3376_v42, %v3375_v43  ;;  %v2779_v42 = vld [vmem:[%s4065_s11 + $0x60] sm:$0xff]  ;;  %v2780_v43 = vld [vmem:[%s4065_s11 + $0x68] sm:$0xff] }
 0xe8d   :  { %3252 = vmatprep.subr.bf16.mxu1 %v3251_v46 }
 0xe8e   :  { %3254 = vmatpush3.bf16.msra.mxu1 %v3251_v46  ;;  %v3279_v46 = vpack.c.bf16 %v2780_v43, %v2779_v42 }
 0xe8f   :  { %v3448_v48 = vpop.eup %3447 }
 0xe90   :  { %v1901_v49 = vmul.f32 %v3448_v48, %v3436_v14 }
 0xe92   :  { %3083 = vmatprep.mubr.msk.f32.mxu1 %vm515_vm3, %v1901_v49 }
 0xe93   :  { %3084 = vmatmul.mubr.msk.f32.vlgmr.msra.gmra.mrb[24].mxu1 %vm515_vm3, %v1902_v51 }
 0xec9   :  { %v3064_v52 = vpop.f32.mrb[20].mxu1 }
 0xeca   :  { %v1981_v53 = vpop.f32.mrb[21].mxu1 }
 0xf31   :  { %v3078_v62 = vpop.f32.mrb[14].mxu0 }
 0xf32   :  { %v2155_v21 = vpop.f32.mrb[15].mxu0 }
 0xf33   :  { %v3071_v23 = vpop.f32.mrb[22].mxu1 }
 0xf34   :  { %2255 = vrot.lane.b32.xlu1 %v3071_v23, %s3486_s20  ;;  %v2068_v63 = vpop.f32.mrb[23].mxu1 }
 0xf35   :  { %2253 = vrot.lane.b32.xlu0 %v2068_v63, %s3486_s20 }
 0xf38   :  { %2263 = vrot.lane.b32.xlu1 %v3078_v62, %s3487_s23 }
 0xf39   :  { %2261 = vrot.lane.b32.xlu0 %v2155_v21, %s3487_s23 }
 0xf66   :  { %v3085_v0 = vpop.f32.mrb[24].mxu1 }
 0xf67   :  { %2271 = vrot.lane.b32.xlu1 %v3085_v0, %s3488_s24  ;;  %v2242_v1 = vpop.f32.mrb[25].mxu1  ;;  %v2781_v0 = vld [vmem:[%s4065_s11 + $0x70] sm:$0xff] }
 0xf68   :  { %2269 = vrot.lane.b32.xlu0 %v2242_v1, %s3488_s24  ;;  %v2782_v1 = vld [vmem:[%s4065_s11 + $0x78] sm:$0xff] }
 0xfa6   :  { %v2256_v2 = vpop.permute.xlu1 %2255 }
 0xfa7   :  { %v2254_v3 = vpop.permute.xlu0 %2253  ;;  %v2276_v9 = vsel %vm170_vm1, %v3064_v52, %v2256_v2  ;;  %v3283_v2 = vpack.c.bf16 %v2782_v1, %v2781_v0 }
 0xfa8   :  { %v2275_v6 = vsel %vm170_vm1, %v1981_v53, %v2254_v3  ;;  %v2772_v3 = vld [vmem:[%s4064_s10 + $0x1] ss:$0 sm:$0xff] }
 0xfaa   :  { %v2264_v4 = vpop.permute.xlu1 %2263 }
 0xfab   :  { %v2262_v5 = vpop.permute.xlu0 %2261  ;;  %v2278_v30 = vsel %vm515_vm3, %v2276_v9, %v2264_v4 }
 0xfac   :  { %v2277_v10 = vsel %vm515_vm3, %v2275_v6, %v2262_v5 }
 0xfd9   :  { %v2272_v7 = vpop.permute.xlu1 %2271 }
 0xfda   :  { %v2270_v12 = vpop.permute.xlu0 %2269  ;;  %v2280_v26 = vsel %vm980_vm4, %v2278_v30, %v2272_v7 }
 0xfdb   :  { %v2279_v13 = vsel %vm980_vm4, %v2277_v10, %v2270_v12  ;;  %v2784_v12 = vld [vmem:[%s4066_s12 + $0x1] ss:$0 sm:$0xff] }
 0xfdc   :  { %3094 = vmatprep.mubr.msk.f32.mxu0 %vm70_vm0, %v2279_v13 }
 0xfdd   :  { %3095 = vmatmul.mubr.msk.f32.vlgmr.msra.gmra.mrb[16].mxu0 %vm70_vm0, %v2280_v26 }
 0xfde   :  { %3274 = vmatpush3.bf16.msra.mxu0 %v3271_v39 }
 0xfdf   :  { %3276 = vmatprep.subr.bf16.mxu0 %v3275_v41 }
 0xfe2   :  { %3278 = vmatpush3.bf16.msra.mxu0 %v3275_v41 }
 0xfe3   :  { %3280 = vmatprep.subr.bf16.mxu0 %v3279_v46 }
 0xfe6   :  { %3282 = vmatpush3.bf16.msra.mxu0 %v3279_v46 }
 0xfe7   :  { %3284 = vmatprep.subr.bf16.mxu0 %v3283_v2 }
 0xfea   :  { %3286 = vmatpush3.bf16.msra.mxu0 %v3283_v2 }
0x10b0   :  { %v3096_v8 = vpop.f32.mrb[16].mxu0 }
0x10b1   :  { %v2372_v14 = vadd.f32 %v3096_v8, %v2760_v11  ;;  %v2366_v15 = vpop.f32.mrb[17].mxu0 }
0x10b2   :  { %v2367_v16 = vadd.f32 %v2760_v11, %v2366_v15 }
0x10b3   :  { %v2376_v50 = vadd.f32 %v2372_v14, %v3831_v37 }
0x10b4   :  { %v2375_v55 = vadd.f32 %v2367_v16, %v3829_v36  ;;  %v2767_v36 = vld [vmem:[%s4063_s9 + $0x20] sm:$0xff] }
0x10b5   :  { %v2384_v18 = vsel %vm70_vm0, %v2376_v50, 0.0  ;;  %v3263_v33 = vpack.c.bf16 %v2768_v32, %v2767_v36 }
0x10b6   :  { %2385 = vadd.xlane.f32.xlu1 %v2384_v18  ;;  %v2381_v19 = vsel %vm70_vm0, %v2375_v55, 0.0 }
0x10b7   :  { %2382 = vadd.xlane.f32.xlu0 %v2381_v19  ;;  %3264 = vmatprep.subr.bf16.mxu1 %v3263_v33 }
0x10b8   :  { %3266 = vmatpush3.bf16.msra.mxu1 %v3263_v33 }
0x10b9   :  { %3268 = vmatprep.subr.bf16.mxu1 %v3267_v34 }
0x10bc   :  { %3270 = vmatpush3.bf16.msra.mxu1 %v3267_v34 }
0x1143   :  { %v2386_v20 = vpop.xlane.xlu1 %2385 }
0x1144   :  { %v2388_v22 = vmul.f32 0.03125, %v2386_v20  ;;  %v2383_v17 = vpop.xlane.xlu0 %2382 }
0x1145   :  { %v2387_v24 = vmul.f32 0.03125, %v2383_v17 }
0x1146   :  { %v2390_v25 = vsub.f32 %v2376_v50, %v2388_v22 }
0x1147   :  { %v2389_v27 = vsub.f32 %v2375_v55, %v2387_v24 }
0x1148   :  { %v2392_v31 = vmul.f32 %v2390_v25, %v2390_v25 }
0x1149   :  { %v2391_v28 = vmul.f32 %v2389_v27, %v2389_v27 }
0x114a   :  { %v2396_v37 = vsel %vm70_vm0, %v2392_v31, 0.0 }
0x114b   :  { %v2393_v29 = vsel %vm70_vm0, %v2391_v28, 0.0 }
0x114c   :  { %2394 = vadd.xlane.f32.xlu0 %v2393_v29 }
0x1150   :  { %2397 = vadd.xlane.f32.xlu0 %v2396_v37 }
0x11d9   :  { %v2395_v47 = vpop.xlane.xlu0 %2394 }
0x11da   :  { %v2399_v48 = vmul.f32 0.03125, %v2395_v47 }
0x11dc   :  { %v2401_v49 = vadd.f32 1e-05, %v2399_v48 }
0x11dd   :  { %v2398_v51 = vpop.xlane.xlu0 %2397 }
0x11de   :  { %3449 = vrsqrt.f32 %v2401_v49  ;;  %v2400_v52 = vmul.f32 0.03125, %v2398_v51 }
0x11e0   :  { %v2402_v53 = vadd.f32 1e-05, %v2400_v52 }
0x11e2   :  { %3451 = vrsqrt.f32 %v2402_v53 }
0x11e8   :  { %v3450_v54 = vpop.eup %3449 }
0x11e9   :  { %v2405_v57 = vmul.f32 %v3450_v54, %v2389_v27 }
0x11eb   :  { %v2413_v60 = vmul.f32 %v2765_v56, %v2405_v57 }
0x11ec   :  { %v3452_v61 = vpop.eup %3451 }
0x11ed   :  { %v2406_v62 = vmul.f32 %v3452_v61, %v2390_v25  ;;  %v2421_v21 = vadd.f32 %v2766_v59, %v2413_v60 }
0x11ef   :  { %v2414_v23 = vmul.f32 %v2765_v56, %v2406_v62  ;;  %3105 = vmatprep.mubr.msk.f32.mxu1 %vm70_vm0, %v2421_v21 }
0x11f1   :  { %v2422_v63 = vadd.f32 %v2766_v59, %v2414_v23 }
0x11f3   :  { %3106 = vmatmul.mubr.msk.f32.vlgmr.msra.gmra.mrb[26].mxu1 %vm70_vm0, %v2422_v63 }
0x12c6   :  { %v3107_v4 = vpop.f32.mrb[26].mxu1 }
0x12c7   :  { %v2514_v5 = vadd.f32 %v3107_v4, %v2772_v3  ;;  %v2508_v6 = vpop.f32.mrb[27].mxu1 }
0x12c8   :  { %v2509_v7 = vadd.f32 %v2772_v3, %v2508_v6 }
0x12c9   :  { %v2518_v10 = vmax.f32 %v2514_v5, 0.0 }
0x12ca   :  { %v2517_v9 = vmax.f32 %v2509_v7, 0.0 }
0x12cc   :  { %3124 = vmatprep.mubr.msk.f32.mxu0 %vm1231_vm5, %v2517_v9 }
0x12cd   :  { %3125 = vmatmul.mubr.msk.f32.vlgmr.msra.gmra.mrb[18].mxu0 %vm1231_vm5, %v2518_v10 }
0x13a0   :  { %v3126_v30 = vpop.f32.mrb[18].mxu0 }
0x13a1   :  { %v2614_v13 = vadd.f32 %v3126_v30, %v2784_v12  ;;  %v2608_v26 = vpop.f32.mrb[19].mxu0 }
0x13a2   :  { %v2609_v11 = vadd.f32 %v2784_v12, %v2608_v26 }
0x13a3   :  { %v2618_v8 = vadd.f32 %v2614_v13, %v2422_v63 }
0x13a4   :  { %v2617_v14 = vadd.f32 %v2609_v11, %v2421_v21 }
0x13a5   :  { %v2626_v15 = vsel %vm70_vm0, %v2618_v8, 0.0 }
0x13a6   :  { %2627 = vadd.xlane.f32.xlu0 %v2626_v15  ;;  %v2623_v16 = vsel %vm70_vm0, %v2617_v14, 0.0 }
0x13a7   :  { %2624 = vadd.xlane.f32.xlu1 %v2623_v16 }
0x1433   :  { %v2628_v50 = vpop.xlane.xlu0 %2627 }
0x1434   :  { %v2630_v55 = vmul.f32 0.03125, %v2628_v50  ;;  %v2625_v18 = vpop.xlane.xlu1 %2624 }
0x1435   :  { %v2629_v19 = vmul.f32 0.03125, %v2625_v18 }
0x1436   :  { %v2632_v20 = vsub.f32 %v2618_v8, %v2630_v55 }
0x1437   :  { %v2631_v22 = vsub.f32 %v2617_v14, %v2629_v19 }
0x1438   :  { %v2634_v17 = vmul.f32 %v2632_v20, %v2632_v20 }
0x1439   :  { %v2633_v24 = vmul.f32 %v2631_v22, %v2631_v22 }
0x143a   :  { %v2638_v25 = vsel %vm70_vm0, %v2634_v17, 0.0 }
0x143b   :  { %2639 = vadd.xlane.f32.xlu0 %v2638_v25  ;;  %v2635_v27 = vsel %vm70_vm0, %v2633_v24, 0.0 }
0x143c   :  { %2636 = vadd.xlane.f32.xlu1 %v2635_v27 }
0x14c8   :  { %v2640_v28 = vpop.xlane.xlu0 %2639 }
0x14c9   :  { %v2642_v29 = vmul.f32 0.03125, %v2640_v28  ;;  %v2637_v31 = vpop.xlane.xlu1 %2636 }
0x14ca   :  { %v2641_v37 = vmul.f32 0.03125, %v2637_v31 }
0x14cb   :  { %v2644_v36 = vadd.f32 1e-05, %v2642_v29 }
0x14cc   :  { %v2643_v32 = vadd.f32 1e-05, %v2641_v37 }
0x14cd   :  { %3453 = vrsqrt.f32 %v2644_v36 }
0x14ce   :  { %3455 = vrsqrt.f32 %v2643_v32 }
0x14d7   :  { %v3454_v33 = vpop.eup %3453 }
0x14d8   :  { %v3456_v45 = vpop.eup %3455  ;;  %v2648_v34 = vmul.f32 %v3454_v33, %v2632_v20 }
0x14d9   :  { %v2647_v44 = vmul.f32 %v3456_v45, %v2631_v22 }
0x14da   :  { %v2656_v38 = vmul.f32 %v2789_v58, %v2648_v34 }
0x14db   :  { %v2655_v39 = vmul.f32 %v2789_v58, %v2647_v44 }
0x14dc   :  { %v2664_v40 = vadd.f32 %v2790_v35, %v2656_v38 }
0x14dd   :  { %v2663_v41 = vadd.f32 %v2790_v35, %v2655_v39 }
0x14de   :  { %2666 = vst.msk [vmem:[#allocation2 + $0x8] sm:$0xff] %vm70_vm0, %v2664_v40 }
0x14df   :  { %2665 = vst.msk [vmem:[#allocation2] sm:$0xff] %vm70_vm0, %v2663_v41 }
0x14e0   :  { %3468 = shalt.err (!%p3465_p4)
}
0x14e1   :  { %s3469_s0 = scalar_lea.hbm %s4069_s15, 256 }
0x14e2   :  { %p3470_p5 = scmp.ne.s32.totalorder %s4069_s15, %s3469_s0  ;;  %p3473_p6 = scmp.lt.u32.totalorder %s3469_s0, %s4069_s15 }
0x14e4   :  { %p3475_p7 = pnand %p3473_p6, %p3470_p5 }
0x14e6   :  { %3478 = shalt.err (!%p3475_p7)
}
0x14e7   :  { %s3490_s2 = smov 128  }
0x14e8   :  { %2678 = dma.vmem_to_hbm [thread:$0]  %s2673_s16, 256, %s4069_s15, [#allocation3], %s3490_s2, %s3490_s2, %s3486_s20  }
0x14e9   :  { %3479 = dma.done.wait [#allocation3], 256  }
0x14ea   :  { %3480 = vsyncadd [#allocation3], 4294967040 }
0x14eb   :  { %2682 = vsyncpa [#allocation3], 1 }

</bundles_post_ra>
